<compile_context>
chip_gen: v5e
topology: v5e:2x2
jax: 0.10.0
libtpu: 0.0.40
codegen_flags: <defaults>
</compile_context>

<pallas_src>
import functools

import jax
import jax.numpy as jnp
from jax.experimental import pallas as pl
from jax.experimental.pallas import tpu as pltpu


def _attention_kernel(x_ref, gamma_ref, beta_ref, wqkv_ref, wo_ref, bo_ref,
                      o_ref, *, heads, dim_head, eps):
    bt, n, dim = x_ref.shape
    m = bt * n
    inner = heads * dim_head
    bh = bt * heads

    # ---- LayerNorm(dim), eps=1e-5, statistics in f32 ----------------------
    x = x_ref[...].reshape(m, dim).astype(jnp.float32)
    mean = jnp.mean(x, axis=-1, keepdims=True)
    xc = x - mean
    var = jnp.mean(xc * xc, axis=-1, keepdims=True)
    xn = xc * jax.lax.rsqrt(var + eps) * gamma_ref[0] + beta_ref[0]
    xn_bf = xn.astype(jnp.bfloat16)          # bf16 matmul operand, f32 accum

    # ---- Fused QKV projection: ONE (m, dim) @ (dim, 3*inner) MXU matmul ---
    # Column layout: [ q(h0..hH-1) | k(h0..hH-1) | v(h0..hH-1) ], softmax
    # scale already folded into the q columns at trace time.
    qkv = jnp.dot(xn_bf, wqkv_ref[...],
                  preferred_element_type=jnp.float32)          # (m, 3*inner) f32

    def split_heads(t):  # (m, inner) f32 -> (bt*heads, n, dim_head) bf16
        return (t.reshape(bt, n, heads, dim_head)
                 .transpose(0, 2, 1, 3)
                 .reshape(bh, n, dim_head)
                 .astype(jnp.bfloat16))

    # Lane-axis slices at multiples of `inner` (tile-aligned when inner%128==0).
    qh = split_heads(qkv[:, :inner])
    kh = split_heads(qkv[:, inner:2 * inner])
    vh = split_heads(qkv[:, 2 * inner:])

    # ---- Head-batched attention, softmax stats in f32 ---------------------
    dots = jnp.einsum('bid,bjd->bij', qh, kh,
                      preferred_element_type=jnp.float32)      # (bh, n, n)
    mx = jnp.max(dots, axis=-1, keepdims=True)
    e = jnp.exp(dots - mx)
    s = jnp.sum(e, axis=-1, keepdims=True)
    attn = e * pl.reciprocal(s, approx=True)                   # EUP divide
    # dropout(p=0.0) is identity (eval semantics)

    out_h = jnp.einsum('bij,bjd->bid', attn.astype(jnp.bfloat16), vh,
                       preferred_element_type=jnp.float32)     # (bh, n, d)

    # ---- 'b h n d -> b n (h d)' then ONE K=inner output projection --------
    out_m = (out_h.reshape(bt, heads, n, dim_head)
                  .transpose(0, 2, 1, 3)
                  .reshape(m, inner)
                  .astype(jnp.bfloat16))
    y = jnp.dot(out_m, wo_ref[...], preferred_element_type=jnp.float32)
    y = y + bo_ref[0]
    o_ref[...] = y.reshape(bt, n, dim).astype(o_ref.dtype)


def _pick_batch_tile(b, n, target_rows=512, min_rows_per_step=256):
    """Largest divisor of b with bt*n <= target_rows rows folded into the
    matmul M dimension.  Only splits into >=2 grid steps (for the two v7x
    TensorCores) if each step still keeps a healthy M; on single-TC chips
    extra grid steps are pure per-step overhead."""
    best = 1
    for bt in range(1, b + 1):
        if b % bt == 0 and bt * n <= target_rows:
            best = bt
    if best == b and b > 1 and b % 2 == 0:
        half = b // 2
        if half * n >= min_rows_per_step:
            best = half
    return best


def _vmem_limit_bytes(default=96 * 1024 * 1024):
    """Generation-aware VMEM limit: <=75% of reported capacity, 96 MiB cap."""
    try:
        cap = getattr(pltpu.get_tpu_info(), "vmem_capacity_bytes", None)
    except Exception:
        cap = None
    if cap is None:
        return default
    return max(16 * 1024 * 1024, min(default, int(cap) * 3 // 4))


def attention_forward(x, params, *, heads, dim_head, batch_tile=None):
    b, n, dim = x.shape
    inner = heads * dim_head
    scale = dim_head ** -0.5
    eps = 1e-5
    gamma, beta, wq, wkv, wo, bo = params

    # ---- Trace-time repacking: fused, lane-dense bf16 weights -------------
    wqkv = jnp.concatenate(
        [wq * scale, wkv[:, :inner], wkv[:, inner:]], axis=-1
    ).astype(jnp.bfloat16)                                     # (dim, 3*inner)
    wo_bf = wo.astype(jnp.bfloat16)                            # (inner, dim)
    gamma = gamma.reshape(1, dim).astype(jnp.float32)
    beta = beta.reshape(1, dim).astype(jnp.float32)
    bo = bo.reshape(1, dim).astype(jnp.float32)

    if batch_tile is None:
        batch_tile = _pick_batch_tile(b, n)
    assert b % batch_tile == 0
    grid = (b // batch_tile,)

    kernel = functools.partial(_attention_kernel, heads=heads,
                               dim_head=dim_head, eps=eps)

    # TODO(synk): for seq lengths >~1k switch to a flash-style KV-tiled online
    # softmax so the (bt*heads, n, n) f32 logits never fully materialize, and
    # single-buffer the grid-invariant weight specs (pipeline_mode=Buffered(1))
    # to shave VMEM on v7x; at these weight sizes the double-buffer cost is
    # negligible so it is skipped here for portability.
    return pl.pallas_call(
        kernel,
        out_shape=jax.ShapeDtypeStruct((b, n, dim), x.dtype),
        grid_spec=pltpu.PrefetchScalarGridSpec(
            num_scalar_prefetch=0,
            grid=grid,
            in_specs=[
                pl.BlockSpec((batch_tile, n, dim), lambda i: (i, 0, 0)),  # x
                pl.BlockSpec((1, dim), lambda i: (0, 0)),                 # gamma
                pl.BlockSpec((1, dim), lambda i: (0, 0)),                 # beta
                pl.BlockSpec((dim, 3 * inner), lambda i: (0, 0)),         # W_qkv
                pl.BlockSpec((inner, dim), lambda i: (0, 0)),             # W_out
                pl.BlockSpec((1, dim), lambda i: (0, 0)),                 # b_out
            ],
            out_specs=pl.BlockSpec((batch_tile, n, dim), lambda i: (i, 0, 0)),
        ),
        compiler_params=pltpu.CompilerParams(
            dimension_semantics=("parallel",),
            vmem_limit_bytes=_vmem_limit_bytes()),
    )(x, gamma, beta, wqkv, wo_bf, bo)


def _reference_forward(x, params, *, heads, dim_head):
    """Plain-JAX f32 reference mirroring the PyTorch module (eval mode)."""
    gamma, beta, wq, wkv, wo, bo = params
    scale = dim_head ** -0.5
    mean = jnp.mean(x, axis=-1, keepdims=True)
    var = jnp.mean((x - mean) ** 2, axis=-1, keepdims=True)
    xn = (x - mean) / jnp.sqrt(var + 1e-5) * gamma[0] + beta[0]
    q = xn @ wq
    kv = xn @ wkv
    inner = heads * dim_head
    k, v = kv[..., :inner], kv[..., inner:]

    def split_heads(t):
        b, n, _ = t.shape
        return t.reshape(b, n, heads, dim_head).transpose(0, 2, 1, 3)

    q, k, v = map(split_heads, (q, k, v))
    dots = jnp.einsum('bhid,bhjd->bhij', q, k) * scale
    attn = jax.nn.softmax(dots, axis=-1)
    out = jnp.einsum('bhij,bhjd->bhid', attn, v)
    out = out.transpose(0, 2, 1, 3).reshape(x.shape[0], x.shape[1], inner)
    return out @ wo + bo[0]


if __name__ == "__main__":
    # Small, lane-aligned shapes consistent with the module:
    # dim=128 (multiple of 128 lanes), heads=4, dim_head=32 -> inner=128.
    b, n, dim = 2, 16, 128
    heads, dim_head = 4, 32
    inner = heads * dim_head

    key = jax.random.PRNGKey(0)
    kx, kq, kkv, ko, kb, kg, kbe = jax.random.split(key, 7)

    x = jax.random.normal(kx, (b, n, dim), dtype=jnp.float32)

    gamma = 1.0 + 0.1 * jax.random.normal(kg, (1, dim), dtype=jnp.float32)
    beta = 0.1 * jax.random.normal(kbe, (1, dim), dtype=jnp.float32)
    wq = jax.random.normal(kq, (dim, inner), dtype=jnp.float32) * 0.05
    wkv = jax.random.normal(kkv, (dim, 2 * inner), dtype=jnp.float32) * 0.05
    wo = jax.random.normal(ko, (inner, dim), dtype=jnp.float32) * 0.05
    bo = jax.random.normal(kb, (1, dim), dtype=jnp.float32) * 0.05

    params = (gamma, beta, wq, wkv, wo, bo)

    out = attention_forward(x, params, heads=heads, dim_head=dim_head)
    out = jax.block_until_ready(out)

    ref = _reference_forward(x, params, heads=heads, dim_head=dim_head)
    assert out.shape == (b, n, dim)
    # bf16 matmul operands + approximate reciprocal -> slightly looser tolerance.
    assert jnp.allclose(out, ref, atol=3e-2, rtol=3e-2), "mismatch vs reference"

    print("KERNEL_OK")
</pallas_src>

<mosaic_0001>
module attributes {stable_mosaic.version = 11 : i64} {
  func.func @_attention_kernel(%arg0: i32, %arg1: memref<2x16x128xf32, #tpu.memory_space<vmem>>, %arg2: memref<1x128xf32, #tpu.memory_space<vmem>>, %arg3: memref<1x128xf32, #tpu.memory_space<vmem>>, %arg4: memref<128x384xbf16, #tpu.memory_space<vmem>>, %arg5: memref<128x128xbf16, #tpu.memory_space<vmem>>, %arg6: memref<1x128xf32, #tpu.memory_space<vmem>>, %arg7: memref<2x16x128xf32, #tpu.memory_space<vmem>>) attributes {dimension_semantics = [#tpu.dimension_semantics<parallel>], iteration_bounds = array<i64: 1>, scalar_prefetch = 0 : i64, scratch_operands = 0 : i64, tpu.core_type = #tpu.core_type<tc>, window_params = [{transform_indices = @transform_0, window_bounds = array<i64: 2, 16, 128>}, {pipeline_mode = #tpu.pipeline_mode<synchronous>, transform_indices = @transform_1, window_bounds = array<i64: 1, 128>}, {pipeline_mode = #tpu.pipeline_mode<synchronous>, transform_indices = @transform_2, window_bounds = array<i64: 1, 128>}, {pipeline_mode = #tpu.pipeline_mode<synchronous>, transform_indices = @transform_3, window_bounds = array<i64: 128, 384>}, {pipeline_mode = #tpu.pipeline_mode<synchronous>, transform_indices = @transform_4, window_bounds = array<i64: 128, 128>}, {pipeline_mode = #tpu.pipeline_mode<synchronous>, transform_indices = @transform_5, window_bounds = array<i64: 1, 128>}, {transform_indices = @transform_6, window_bounds = array<i64: 2, 16, 128>}]} {
    %c0 = arith.constant 0 : index
    %c0_0 = arith.constant 0 : index
    %c0_1 = arith.constant 0 : index
    %0 = vector.load %arg1[%c0, %c0_0, %c0_1] : memref<2x16x128xf32, #tpu.memory_space<vmem>>, vector<2x16x128xf32>
    %1 = vector.shape_cast %0 : vector<2x16x128xf32> to vector<32x128xf32>
    %cst = arith.constant dense<0.000000e+00> : vector<32xf32>
    %2 = vector.multi_reduction <add>, %1, %cst [1] : vector<32x128xf32> to vector<32xf32>
    %3 = vector.shape_cast %2 : vector<32xf32> to vector<32x1xf32>
    %cst_2 = arith.constant 1.280000e+02 : f32
    %4 = vector.broadcast %cst_2 : f32 to vector<32x1xf32>
    %5 = arith.divf %3, %4 : vector<32x1xf32>
    %6 = vector.broadcast %5 : vector<32x1xf32> to vector<32x128xf32>
    %7 = arith.subf %1, %6 : vector<32x128xf32>
    %8 = arith.mulf %7, %7 : vector<32x128xf32>
    %cst_3 = arith.constant dense<0.000000e+00> : vector<32xf32>
    %9 = vector.multi_reduction <add>, %8, %cst_3 [1] : vector<32x128xf32> to vector<32xf32>
    %10 = vector.shape_cast %9 : vector<32xf32> to vector<32x1xf32>
    %cst_4 = arith.constant 1.280000e+02 : f32
    %11 = vector.broadcast %cst_4 : f32 to vector<32x1xf32>
    %12 = arith.divf %10, %11 : vector<32x1xf32>
    %cst_5 = arith.constant 9.99999974E-6 : f32
    %13 = vector.broadcast %cst_5 : f32 to vector<32x1xf32>
    %14 = arith.addf %12, %13 : vector<32x1xf32>
    %15 = math.rsqrt %14 : vector<32x1xf32>
    %16 = vector.broadcast %15 : vector<32x1xf32> to vector<32x128xf32>
    %17 = arith.mulf %7, %16 : vector<32x128xf32>
    %c0_6 = arith.constant 0 : index
    %c0_7 = arith.constant 0 : index
    %18 = vector.load %arg2[%c0_6, %c0_7] : memref<1x128xf32, #tpu.memory_space<vmem>>, vector<1x128xf32>
    %19 = vector.shape_cast %18 : vector<1x128xf32> to vector<128xf32>
    %20 = vector.shape_cast %19 : vector<128xf32> to vector<1x128xf32>
    %21 = vector.broadcast %20 : vector<1x128xf32> to vector<32x128xf32>
    %22 = arith.mulf %17, %21 : vector<32x128xf32>
    %c0_8 = arith.constant 0 : index
    %c0_9 = arith.constant 0 : index
    %23 = vector.load %arg3[%c0_8, %c0_9] : memref<1x128xf32, #tpu.memory_space<vmem>>, vector<1x128xf32>
    %24 = vector.shape_cast %23 : vector<1x128xf32> to vector<128xf32>
    %25 = vector.shape_cast %24 : vector<128xf32> to vector<1x128xf32>
    %26 = vector.broadcast %25 : vector<1x128xf32> to vector<32x128xf32>
    %27 = arith.addf %22, %26 : vector<32x128xf32>
    %28 = arith.truncf %27 : vector<32x128xf32> to vector<32x128xbf16>
    %c0_10 = arith.constant 0 : index
    %c0_11 = arith.constant 0 : index
    %29 = vector.load %arg4[%c0_10, %c0_11] : memref<128x384xbf16, #tpu.memory_space<vmem>>, vector<128x384xbf16>
    %cst_12 = arith.constant dense<0.000000e+00> : vector<32x384xf32>
    %30 = tpu.matmul %28, %29, %cst_12 {dimension_numbers = #tpu.dot_dimension_numbers<[1], [0], [0], [1], [0, 0, 1, 1], [], []>} : vector<32x128xbf16>, vector<128x384xbf16>, vector<32x384xf32> -> vector<32x384xf32>
    %31 = vector.extract_strided_slice %30 {offsets = [0, 0], sizes = [32, 128], strides = [1, 1]} : vector<32x384xf32> to vector<32x128xf32>
    %32 = vector.shape_cast %31 : vector<32x128xf32> to vector<2x16x4x32xf32>
    %33 = tpu.transpose %32, [0, 2, 1, 3] : vector<2x16x4x32xf32> -> vector<2x4x16x32xf32>
    %34 = vector.shape_cast %33 : vector<2x4x16x32xf32> to vector<8x16x32xf32>
    %35 = arith.truncf %34 : vector<8x16x32xf32> to vector<8x16x32xbf16>
    %36 = vector.extract_strided_slice %30 {offsets = [0, 128], sizes = [32, 128], strides = [1, 1]} : vector<32x384xf32> to vector<32x128xf32>
    %37 = vector.shape_cast %36 : vector<32x128xf32> to vector<2x16x4x32xf32>
    %38 = tpu.transpose %37, [0, 2, 1, 3] : vector<2x16x4x32xf32> -> vector<2x4x16x32xf32>
    %39 = vector.shape_cast %38 : vector<2x4x16x32xf32> to vector<8x16x32xf32>
    %40 = arith.truncf %39 : vector<8x16x32xf32> to vector<8x16x32xbf16>
    %41 = vector.extract_strided_slice %30 {offsets = [0, 256], sizes = [32, 128], strides = [1, 1]} : vector<32x384xf32> to vector<32x128xf32>
    %42 = vector.shape_cast %41 : vector<32x128xf32> to vector<2x16x4x32xf32>
    %43 = tpu.transpose %42, [0, 2, 1, 3] : vector<2x16x4x32xf32> -> vector<2x4x16x32xf32>
    %44 = vector.shape_cast %43 : vector<2x4x16x32xf32> to vector<8x16x32xf32>
    %45 = arith.truncf %44 : vector<8x16x32xf32> to vector<8x16x32xbf16>
    "tpu.trace_start"() <{level = 10 : i32, message = "bid,bjd->bij"}> : () -> ()
    %cst_13 = arith.constant dense<0.000000e+00> : vector<8x16x16xf32>
    %46 = tpu.matmul %35, %40, %cst_13 {dimension_numbers = #tpu.dot_dimension_numbers<[2], [2], [1], [1], [0, 0, 0, 1, 1, 1], [0], [0]>} : vector<8x16x32xbf16>, vector<8x16x32xbf16>, vector<8x16x16xf32> -> vector<8x16x16xf32>
    "tpu.trace_stop"() : () -> ()
    %cst_14 = arith.constant dense<0xFF800000> : vector<8x16xf32>
    %47 = vector.multi_reduction <maximumf>, %46, %cst_14 [2] : vector<8x16x16xf32> to vector<8x16xf32>
    %48 = vector.shape_cast %47 : vector<8x16xf32> to vector<8x16x1xf32>
    %49 = vector.broadcast %48 : vector<8x16x1xf32> to vector<8x16x16xf32>
    %50 = arith.subf %46, %49 : vector<8x16x16xf32>
    %51 = math.exp %50 : vector<8x16x16xf32>
    %cst_15 = arith.constant dense<0.000000e+00> : vector<8x16xf32>
    %52 = vector.multi_reduction <add>, %51, %cst_15 [2] : vector<8x16x16xf32> to vector<8x16xf32>
    %53 = vector.shape_cast %52 : vector<8x16xf32> to vector<8x16x1xf32>
    %54 = tpu.reciprocal %53 {approx = true} : vector<8x16x1xf32> -> vector<8x16x1xf32>
    %55 = vector.broadcast %54 : vector<8x16x1xf32> to vector<8x16x16xf32>
    %56 = arith.mulf %51, %55 : vector<8x16x16xf32>
    %57 = arith.truncf %56 : vector<8x16x16xf32> to vector<8x16x16xbf16>
    "tpu.trace_start"() <{level = 10 : i32, message = "bij,bjd->bid"}> : () -> ()
    %cst_16 = arith.constant dense<0.000000e+00> : vector<8x16x32xf32>
    %58 = tpu.matmul %57, %45, %cst_16 {dimension_numbers = #tpu.dot_dimension_numbers<[2], [1], [1], [2], [0, 0, 0, 1, 1, 2], [0], [0]>} : vector<8x16x16xbf16>, vector<8x16x32xbf16>, vector<8x16x32xf32> -> vector<8x16x32xf32>
    "tpu.trace_stop"() : () -> ()
    %59 = vector.shape_cast %58 : vector<8x16x32xf32> to vector<2x4x16x32xf32>
    %60 = tpu.transpose %59, [0, 2, 1, 3] : vector<2x4x16x32xf32> -> vector<2x16x4x32xf32>
    %61 = vector.shape_cast %60 : vector<2x16x4x32xf32> to vector<32x128xf32>
    %62 = arith.truncf %61 : vector<32x128xf32> to vector<32x128xbf16>
    %c0_17 = arith.constant 0 : index
    %c0_18 = arith.constant 0 : index
    %63 = vector.load %arg5[%c0_17, %c0_18] : memref<128x128xbf16, #tpu.memory_space<vmem>>, vector<128x128xbf16>
    %cst_19 = arith.constant dense<0.000000e+00> : vector<32x128xf32>
    %64 = tpu.matmul %62, %63, %cst_19 {dimension_numbers = #tpu.dot_dimension_numbers<[1], [0], [0], [1], [0, 0, 1, 1], [], []>} : vector<32x128xbf16>, vector<128x128xbf16>, vector<32x128xf32> -> vector<32x128xf32>
    %c0_20 = arith.constant 0 : index
    %c0_21 = arith.constant 0 : index
    %65 = vector.load %arg6[%c0_20, %c0_21] : memref<1x128xf32, #tpu.memory_space<vmem>>, vector<1x128xf32>
    %66 = vector.shape_cast %65 : vector<1x128xf32> to vector<128xf32>
    %67 = vector.shape_cast %66 : vector<128xf32> to vector<1x128xf32>
    %68 = vector.broadcast %67 : vector<1x128xf32> to vector<32x128xf32>
    %69 = arith.addf %64, %68 : vector<32x128xf32>
    %70 = vector.shape_cast %69 : vector<32x128xf32> to vector<2x16x128xf32>
    %c0_22 = arith.constant 0 : index
    %c0_23 = arith.constant 0 : index
    %c0_24 = arith.constant 0 : index
    %71 = vector.load %arg7[%c0_22, %c0_23, %c0_24] : memref<2x16x128xf32, #tpu.memory_space<vmem>>, vector<2x16x128xf32>
    tpu.vector_store %arg7[%c0_22, %c0_23, %c0_24], %70 {strides = array<i32>} : memref<2x16x128xf32, #tpu.memory_space<vmem>>, vector<2x16x128xf32>,
    return
  }
  func.func @transform_0(%arg0: i32) -> (i32, i32, i32) {
    %c0_i32 = arith.constant 0 : i32
    %c0_i32_0 = arith.constant 0 : i32
    %c0_i32_1 = arith.constant 0 : i32
    return %arg0, %c0_i32, %c0_i32_0 : i32, i32, i32
  }
  func.func @transform_1(%arg0: i32) -> (i32, i32) {
    %c0_i32 = arith.constant 0 : i32
    %c0_i32_0 = arith.constant 0 : i32
    %c0_i32_1 = arith.constant 0 : i32
    return %c0_i32, %c0_i32_0 : i32, i32
  }
  func.func @transform_2(%arg0: i32) -> (i32, i32) {
    %c0_i32 = arith.constant 0 : i32
    %c0_i32_0 = arith.constant 0 : i32
    %c0_i32_1 = arith.constant 0 : i32
    return %c0_i32, %c0_i32_0 : i32, i32
  }
  func.func @transform_3(%arg0: i32) -> (i32, i32) {
    %c0_i32 = arith.constant 0 : i32
    %c0_i32_0 = arith.constant 0 : i32
    %c0_i32_1 = arith.constant 0 : i32
    return %c0_i32, %c0_i32_0 : i32, i32
  }
  func.func @transform_4(%arg0: i32) -> (i32, i32) {
    %c0_i32 = arith.constant 0 : i32
    %c0_i32_0 = arith.constant 0 : i32
    %c0_i32_1 = arith.constant 0 : i32
    return %c0_i32, %c0_i32_0 : i32, i32
  }
  func.func @transform_5(%arg0: i32) -> (i32, i32) {
    %c0_i32 = arith.constant 0 : i32
    %c0_i32_0 = arith.constant 0 : i32
    %c0_i32_1 = arith.constant 0 : i32
    return %c0_i32, %c0_i32_0 : i32, i32
  }
  func.func @transform_6(%arg0: i32) -> (i32, i32, i32) {
    %c0_i32 = arith.constant 0 : i32
    %c0_i32_0 = arith.constant 0 : i32
    %c0_i32_1 = arith.constant 0 : i32
    return %arg0, %c0_i32, %c0_i32_0 : i32, i32, i32
  }
}

</mosaic_0001>

<bundles_post_ra>
// kernel: tpu_custom_call.1
= control target key start
LH: loop header
LB: loop body
LE: loop exit
PB: predicated region body
PF: predicated region fallthrough
CT: control target
= control target key end

     0   :  { %11 = vsyncpa [#allocation3], 0  ;;  %s5304_s0 = inlined_call_operand.hbm [shape: f32[2,16,128], index: 0, kind: input, shape index: {}]   ;;  %s5305_s1 = inlined_call_operand.hbm [shape: f32[1,128], index: 1, kind: input, shape index: {}]   ;;  %s5306_s2 = inlined_call_operand.vmem [shape: f32[1,128], index: 2, kind: input, shape index: {}]   ;;  %s5307_s3 = inlined_call_operand.hbm [shape: bf16[128,384], index: 3, kind: input, shape index: {}]   ;;  %s5308_s4 = inlined_call_operand.hbm [shape: bf16[128,128], index: 4, kind: input, shape index: {}]   ;;  %s5309_s5 = inlined_call_operand.vmem [shape: f32[1,128], index: 5, kind: input, shape index: {}]   ;;  %s5310_s6 = inlined_call_operand.hbm [shape: f32[2,16,128], index: 6, kind: output, shape index: {}]  }
   0x1   :  { %12 = vsyncpa [#allocation6], 0 }
   0x2   :  { %13 = vsyncpa [#allocation9], 0  ;;  %s33_s23 = sshll.u32 %s5305_s1, 4  ;;  %s34_s23 = int_to_ptr.hbm [resolvable:$true] %s33_s23 }
   0x3   :  { %14 = vsyncpa [#allocation4], 0  ;;  %s3692_s24 = smov [#allocation5]   ;;  %s19_s28 = sshll.u32 %s5304_s0, 4  ;;  %s20_s28 = int_to_ptr.hbm [resolvable:$true] %s19_s28 }
   0x4   :  { %s35_s25 = sshll.u32 %s3692_s24, 4  ;;  %s3693_s29 = smov [#allocation2]   ;;  %s36_s25 = int_to_ptr.vmem [resolvable:$true] %s35_s25 }
   0x5   :  { %38 = dma.hbm_to_vmem [thread:$0]  %s34_s23, 16, %s36_s25, [#allocation6]  }
   0x6   :  { %s21_s30 = sshll.u32 %s3693_s29, 4  ;;  %s3694_s7 = smov 128   ;;  %s22_s30 = int_to_ptr.vmem [resolvable:$true] %s21_s30 }
   0x7   :  { %s3695_s8 = smov 8   ;;  %s45_s10 = sshll.u32 %s5307_s3, 4  ;;  %s46_s10 = int_to_ptr.hbm [resolvable:$true] %s45_s10 }
   0x8   :  { %27 = dma.hbm_to_vmem [thread:$0]  %s20_s28, 512, %s22_s30, [#allocation3], %s3694_s7, %s3694_s7, %s3695_s8  }
   0x9   :  { %s3696_s11 = smov [#allocation7]   ;;  %s58_s14 = sshll.u32 %s5308_s4, 4  ;;  %s59_s14 = int_to_ptr.hbm [resolvable:$true] %s58_s14 }
   0xa   :  { %s47_s12 = sshll.u32 %s3696_s11, 4  ;;  %s3697_s15 = smov 192   ;;  %s48_s12 = int_to_ptr.vmem [resolvable:$true] %s47_s12 }
   0xb   :  { %s3698_s16 = smov 12   ;;  %s3699_s17 = smov [#allocation8]  }
   0xc   :  { %53 = dma.hbm_to_vmem [thread:$0]  %s46_s10, 3072, %s48_s12, [#allocation6], %s3697_s15, %s3697_s15, %s3698_s16  }
   0xd   :  { %s60_s18 = sshll.u32 %s3699_s17, 4  ;;  %s3700_s19 = smov 64   ;;  %s61_s18 = int_to_ptr.vmem [resolvable:$true] %s60_s18 }
   0xe   :  { %s3701_s20 = smov 4  }
   0xf   :  { %66 = dma.hbm_to_vmem [thread:$0]  %s59_s14, 1024, %s61_s18, [#allocation9], %s3700_s19, %s3700_s19, %s3701_s20  }
  0x10   :  { %3684 = dma.done.wait [#allocation3], 512  }
  0x11   :  { %3685 = vsyncadd [#allocation3], 4294966784 }
  0x12   :  { %3686 = dma.done.wait [#allocation6], 3088  }
  0x13   :  { %3687 = vsyncadd [#allocation6], 4294964208 }
  0x14   :  { %3688 = dma.done.wait [#allocation9], 1024  }
  0x15   :  { %3689 = vsyncadd [#allocation9], 4294966272  ;;  %v88_v0 = vld [vmem:[#allocation2 + $0x10] sm:$0xff]  ;;  %v86_v1 = vld [vmem:[#allocation2] sm:$0xff]  ;;  %v3702_v4 = vmov 128.0   ;;  %s3704_s21 = smov 96  }
  0x16   :  { %94 = vadd.xlane.f32.xlu1 %v88_v0  ;;  %90 = vadd.xlane.f32.xlu0 %v86_v1  ;;  %v89_v2 = vld [vmem:[#allocation2 + $0x18] sm:$0xff]  ;;  %v87_v3 = vld [vmem:[#allocation2 + $0x8] sm:$0xff]  ;;  %3490 = vrcp.f32 %v3702_v4  ;;  %v3269_v29 = vld [vmem:[#allocation7 + $0xb0] sm:$0xf]  ;;  %vm453_vm13 = vcmask 1047556   ;;  %vm1911_vm14 = vcmask 261120  }
  0x17   :  { %v3261_v27 = vld [vmem:[#allocation7 + $0xa8] sm:$0xf]  ;;  %v3341_v28 = vld [vmem:[#allocation7 + $0xb0] sm:$0xf0]  ;;  %v3342_v31 = vld [vmem:[#allocation7 + $0xb8] sm:$0xf0] }
  0x18   :  { %v3262_v30 = vor.u32 %v3341_v28, %v3261_v27  ;;  %v3270_v32 = vor.u32 %v3342_v31, %v3269_v29  ;;  %v3249_v33 = vld [vmem:[#allocation7 + $0x90] sm:$0xf]  ;;  %v3338_v34 = vld [vmem:[#allocation7 + $0x98] sm:$0xf0]  ;;  %v3257_v35 = vld [vmem:[#allocation7 + $0x98] sm:$0xf] }
  0x19   :  { %v3250_v36 = vor.u32 %v3338_v34, %v3249_v33  ;;  %v3339_v37 = vld [vmem:[#allocation7 + $0xa0] sm:$0xf0]  ;;  %v3237_v39 = vld [vmem:[#allocation7 + $0x78] sm:$0xf]  ;;  %v3245_v41 = vld [vmem:[#allocation7 + $0x80] sm:$0xf] }
  0x1a   :  { %355 = vmatpush.bf16.msra.mxu1 %v3262_v30  ;;  %393 = vmatpush.bf16.msra.mxu2 %v3270_v32  ;;  %v3258_v38 = vor.u32 %v3339_v37, %v3257_v35  ;;  %v3335_v40 = vld [vmem:[#allocation7 + $0x80] sm:$0xf0]  ;;  %v3336_v43 = vld [vmem:[#allocation7 + $0x88] sm:$0xf0]  ;;  %v3225_v45 = vld [vmem:[#allocation7 + $0x60] sm:$0xf] }
  0x1b   :  { %v3238_v42 = vor.u32 %v3335_v40, %v3237_v39  ;;  %v3246_v44 = vor.u32 %v3336_v43, %v3245_v41  ;;  %v3332_v46 = vld [vmem:[#allocation7 + $0x68] sm:$0xf0]  ;;  %v3233_v47 = vld [vmem:[#allocation7 + $0x68] sm:$0xf]  ;;  %v3333_v49 = vld [vmem:[#allocation7 + $0x70] sm:$0xf0] }
  0x1c   :  { %v3491_v5 = vpop.eup %3490  ;;  %v3226_v48 = vor.u32 %v3332_v46, %v3225_v45  ;;  %v3234_v50 = vor.u32 %v3333_v49, %v3233_v47  ;;  %v3213_v51 = vld [vmem:[#allocation7 + $0x48] sm:$0xf]  ;;  %v3329_v52 = vld [vmem:[#allocation7 + $0x50] sm:$0xf0]  ;;  %v3221_v53 = vld [vmem:[#allocation7 + $0x50] sm:$0xf] }
  0x1d   :  { %v99_v6 = vmul.f32 128.0, %v3491_v5  ;;  %vm103_vm0 = vweird.f32 %v3491_v5  ;;  %v3214_v54 = vor.u32 %v3329_v52, %v3213_v51  ;;  %v3330_v55 = vld [vmem:[#allocation7 + $0x58] sm:$0xf0]  ;;  %v3201_v57 = vld [vmem:[#allocation7 + $0x30] sm:$0xf]  ;;  %vm2142_vm15 = vcmask 130048  }
  0x1e   :  { %96 = vadd.xlane.f32.xlu1 %v89_v2  ;;  %92 = vadd.xlane.f32.xlu0 %v87_v3  ;;  %v3222_v56 = vor.u32 %v3330_v55, %v3221_v53  ;;  %v3326_v58 = vld [vmem:[#allocation7 + $0x38] sm:$0xf0]  ;;  %v3209_v59 = vld [vmem:[#allocation7 + $0x38] sm:$0xf]  ;;  %v3327_v61 = vld [vmem:[#allocation7 + $0x40] sm:$0xf0] }
  0x1f   :  { %v100_v7 = vsub.f32 1.0, %v99_v6  ;;  %356 = vmatpush.bf16.msra.mxu1 %v3250_v36  ;;  %394 = vmatpush.bf16.msra.mxu2 %v3258_v38  ;;  %v3202_v60 = vor.u32 %v3326_v58, %v3201_v57  ;;  %v3210_v62 = vor.u32 %v3327_v61, %v3209_v59  ;;  %v3189_v63 = vld [vmem:[#allocation7 + $0x18] sm:$0xf]  ;;  %v3177_v6 = vld [vmem:[#allocation7] sm:$0xf]  ;;  %s3707_s24 = smov [#allocation10]  }
  0x20   :  { %v3337_v27 = vld [vmem:[#allocation7 + $0x94] sm:$0xf]  ;;  %v3251_v28 = vld [vmem:[#allocation7 + $0x9c] sm:$0xf0]  ;;  %v3334_v32 = vld [vmem:[#allocation7 + $0x7c] sm:$0xf] }
  0x21   :  { %v101_v8 = vmul.f32 %v3491_v5, %v100_v7  ;;  %v3320_v7 = vld [vmem:[#allocation7 + $0x8] sm:$0xf0]  ;;  %v3254_v31 = vor.u32 %v3337_v27, %v3251_v28  ;;  %v3239_v33 = vld [vmem:[#allocation7 + $0x84] sm:$0xf0]  ;;  %v3331_v40 = vld [vmem:[#allocation7 + $0x64] sm:$0xf] }
  0x22   :  { %v3242_v38 = vor.u32 %v3334_v32, %v3239_v33  ;;  %v3227_v41 = vld [vmem:[#allocation7 + $0x6c] sm:$0xf0]  ;;  %v3328_v51 = vld [vmem:[#allocation7 + $0x4c] sm:$0xf]  ;;  %v3215_v52 = vld [vmem:[#allocation7 + $0x54] sm:$0xf0] }
  0x23   :  { %v102_v9 = vadd.f32 %v3491_v5, %v101_v8  ;;  %357 = vmatpush.bf16.msra.mxu1 %v3238_v42  ;;  %395 = vmatpush.bf16.msra.mxu2 %v3246_v44  ;;  %v3185_v8 = vld [vmem:[#allocation7 + $0x8] sm:$0xf]  ;;  %v3230_v42 = vor.u32 %v3331_v40, %v3227_v41  ;;  %v3218_v55 = vor.u32 %v3328_v51, %v3215_v52  ;;  %v3203_v57 = vld [vmem:[#allocation7 + $0x3c] sm:$0xf0]  ;;  %v3705_v52 = vmov 1983009808  }
  0x24   :  { %s3158_s25 = sshll.u32 %s3707_s24, 4  ;;  %s3160_s28 = sshll.u32 %s5310_s6, 4  ;;  %s3159_s25 = int_to_ptr.vmem [resolvable:$true] %s3158_s25  ;;  %s3161_s28 = int_to_ptr.hbm [resolvable:$true] %s3160_s28 }
  0x25   :  { %v3760_v10 = vsel %vm103_vm0, %v3491_v5, %v102_v9  ;;  %vm3051_vm0 = vcmask 523264  }
  0x27   :  { %358 = vmatpush.bf16.msra.mxu1 %v3226_v48  ;;  %396 = vmatpush.bf16.msra.mxu2 %v3234_v50 }
  0x2b   :  { %359 = vmatpush.bf16.msra.mxu1 %v3214_v54  ;;  %397 = vmatpush.bf16.msra.mxu2 %v3222_v56  ;;  %v3325_v56 = vld [vmem:[#allocation7 + $0x34] sm:$0xf] }
  0x2c   :  { %v3206_v61 = vor.u32 %v3325_v56, %v3203_v57 }
  0x2f   :  { %360 = vmatpush.bf16.msra.mxu1 %v3202_v60  ;;  %398 = vmatpush.bf16.msra.mxu2 %v3210_v62  ;;  %v3322_v62 = vld [vmem:[#allocation7 + $0x1c] sm:$0xf] }
  0x89   :  { %v95_v11 = vpop.xlane.xlu1 %94  ;;  %v91_v12 = vpop.xlane.xlu0 %90 }
  0x8a   :  { %v107_v13 = vmul.f32 %v3760_v10, %v95_v11  ;;  %v105_v14 = vmul.f32 %v3760_v10, %v91_v12  ;;  %v3178_v12 = vor.u32 %v3320_v7, %v3177_v6  ;;  %v3319_v7 = vld [vmem:[#allocation7 + $0x4] sm:$0xf] }
  0x8c   :  { %v3764_v15 = vsub.f32 %v88_v0, %v107_v13  ;;  %v3766_v16 = vsub.f32 %v86_v1, %v105_v14  ;;  %v3323_v0 = vld [vmem:[#allocation7 + $0x20] sm:$0xf0]  ;;  %v3197_v1 = vld [vmem:[#allocation7 + $0x20] sm:$0xf]  ;;  %v3321_v13 = vld [vmem:[#allocation7 + $0x10] sm:$0xf0] }
  0x8d   :  { %v3186_v14 = vor.u32 %v3321_v13, %v3185_v8  ;;  %v3179_v8 = vld [vmem:[#allocation7 + $0xc] sm:$0xf0] }
  0x8e   :  { %v115_v17 = vmul.f32 %v3764_v15, %v3764_v15  ;;  %v113_v18 = vmul.f32 %v3766_v16, %v3766_v16 }
  0x90   :  { %121 = vadd.xlane.f32.xlu0 %v115_v17  ;;  %117 = vadd.xlane.f32.xlu2 %v113_v18 }
  0x91   :  { %v97_v19 = vpop.xlane.xlu1 %96  ;;  %v93_v20 = vpop.xlane.xlu0 %92 }
  0x92   :  { %v108_v21 = vmul.f32 %v3760_v10, %v97_v19  ;;  %v106_v22 = vmul.f32 %v3760_v10, %v93_v20  ;;  %v3340_v19 = vld [vmem:[#allocation7 + $0xac] sm:$0xf]  ;;  %v3263_v20 = vld [vmem:[#allocation7 + $0xb4] sm:$0xf0] }
  0x94   :  { %v3774_v23 = vsub.f32 %v89_v2, %v108_v21  ;;  %v3776_v24 = vsub.f32 %v87_v3, %v106_v22  ;;  %v3190_v2 = vor.u32 %v3323_v0, %v3189_v63  ;;  %v3324_v3 = vld [vmem:[#allocation7 + $0x28] sm:$0xf0]  ;;  %v3266_v21 = vor.u32 %v3340_v19, %v3263_v20  ;;  %v3191_v63 = vld [vmem:[#allocation7 + $0x24] sm:$0xf0] }
  0x95   :  { %v3198_v5 = vor.u32 %v3324_v3, %v3197_v1  ;;  %v3487_v3 = vld [vmem:[#allocation5] ss:$0 sm:$0xff]  ;;  %v3194_v6 = vor.u32 %v3322_v62, %v3191_v63  ;;  %v3706_v62 = vmov 1934713408  }
  0x96   :  { %v116_v25 = vmul.f32 %v3774_v23, %v3774_v23  ;;  %v114_v26 = vmul.f32 %v3776_v24, %v3776_v24  ;;  %361 = vmatpush.bf16.msra.mxu1 %v3190_v2  ;;  %v482_v63 = vunpack.c.l.s4 %v3706_v62 }
  0x97   :  { %399 = vmatpush.bf16.msra.mxu2 %v3198_v5 }
  0x98   :  { %123 = vadd.xlane.f32.xlu1 %v116_v25  ;;  %119 = vadd.xlane.f32.xlu2 %v114_v26 }
  0x9a   :  { %362 = vmatpush.bf16.msra.mxu1 %v3178_v12 }
  0x9b   :  { %400 = vmatpush.bf16.msra.mxu2 %v3186_v14  ;;  %v3488_v14 = vld [vmem:[%s5306_s2] ss:$0 sm:$0xff]  ;;  %s3703_s2 = smov 32  }
  0x9e   :  { %374 = vmatpush.bf16.msrb.mxu1 %v3266_v21 }
  0xa2   :  { %375 = vmatpush.bf16.msrb.mxu1 %v3254_v31 }
  0xa6   :  { %376 = vmatpush.bf16.msrb.mxu1 %v3242_v38 }
  0xaa   :  { %377 = vmatpush.bf16.msrb.mxu1 %v3230_v42 }
  0xae   :  { %378 = vmatpush.bf16.msrb.mxu1 %v3218_v55 }
  0xb2   :  { %379 = vmatpush.bf16.msrb.mxu1 %v3206_v61 }
  0xb6   :  { %380 = vmatpush.bf16.msrb.mxu1 %v3194_v6 }
 0x103   :  { %v118_v4 = vpop.xlane.xlu2 %117  ;;  %v122_v11 = vpop.xlane.xlu0 %121 }
 0x104   :  { %v125_v9 = vmul.f32 %v118_v4, %v3760_v10  ;;  %v127_v18 = vmul.f32 %v122_v11, %v3760_v10 }
 0x106   :  { %v129_v17 = vadd.f32 1e-05, %v125_v9  ;;  %v3784_v22 = vadd.f32 1e-05, %v127_v18 }
 0x108   :  { %3492 = vrsqrt.f32 %v129_v17  ;;  %vm139_vm2 = vweird.f32 %v129_v17  ;;  %vm159_vm9 = vweird.f32 %v3784_v22 }
 0x109   :  { %3494 = vrsqrt.f32 %v3784_v22 }
 0x10b   :  { %v124_v25 = vpop.xlane.xlu1 %123  ;;  %v120_v26 = vpop.xlane.xlu2 %119 }
 0x10c   :  { %v128_v29 = vmul.f32 %v124_v25, %v3760_v10  ;;  %v126_v30 = vmul.f32 %v120_v26, %v3760_v10 }
 0x10e   :  { %v3493_v34 = vpop.eup %3492  ;;  %v3788_v35 = vadd.f32 1e-05, %v128_v29  ;;  %v130_v36 = vadd.f32 1e-05, %v126_v30 }
 0x10f   :  { %v134_v37 = vmul.f32 %v3493_v34, %v129_v17  ;;  %v3792_v43 = vpop.eup %3494  ;;  %vm140_vm1 = vweird.f32 %v3493_v34 }
 0x110   :  { %3496 = vrsqrt.f32 %v3788_v35  ;;  %v154_v49 = vmul.f32 %v3792_v43, %v3784_v22  ;;  %vm141_vm3 = vmor %vm139_vm2, %vm140_vm1  ;;  %vm149_vm5 = vweird.f32 %v130_v36  ;;  %vm169_vm7 = vweird.f32 %v3788_v35 }
 0x111   :  { %v135_v39 = vmul.f32 %v3493_v34, %v134_v37  ;;  %3498 = vrsqrt.f32 %v130_v36  ;;  %vm160_vm10 = vweird.f32 %v3792_v43  ;;  %vm3056_vm1 = vcmask 785408  }
 0x112   :  { %v155_v59 = vmul.f32 %v3792_v43, %v154_v49  ;;  %vm161_vm12 = vmor %vm159_vm9, %vm160_vm10 }
 0x113   :  { %v136_v10 = vmul.f32 0.5, %v135_v39 }
 0x114   :  { %v156_v4 = vmul.f32 0.5, %v155_v59 }
 0x115   :  { %v137_v44 = vsub.f32 1.5, %v136_v10 }
 0x116   :  { %v3794_v45 = vpop.eup %3496  ;;  %v157_v17 = vsub.f32 1.5, %v156_v4 }
 0x117   :  { %v3499_v46 = vpop.eup %3498  ;;  %v164_v47 = vmul.f32 %v3794_v45, %v3788_v35  ;;  %v138_v48 = vmul.f32 %v3493_v34, %v137_v44  ;;  %vm170_vm8 = vweird.f32 %v3794_v45 }
 0x118   :  { %v144_v50 = vmul.f32 %v3499_v46, %v130_v36  ;;  %vm150_vm4 = vweird.f32 %v3499_v46  ;;  %vm171_vm11 = vmor %vm169_vm7, %vm170_vm8  ;;  %v158_v21 = vmul.f32 %v3792_v43, %v157_v17 }
 0x119   :  { %v165_v53 = vmul.f32 %v3794_v45, %v164_v47  ;;  %v142_v58 = vsel %vm141_vm3, %v3493_v34, %v138_v48  ;;  %vm151_vm6 = vmor %vm149_vm5, %vm150_vm4 }
 0x11a   :  { %v145_v54 = vmul.f32 %v3499_v46, %v144_v50  ;;  %v173_v2 = vmul.f32 %v142_v58, %v3766_v16  ;;  %v3182_v16 = vor.u32 %v3319_v7, %v3179_v8  ;;  %v162_v27 = vsel %vm161_vm12, %v3792_v43, %v158_v21 }
 0x11b   :  { %v166_v0 = vmul.f32 0.5, %v165_v53  ;;  %v175_v28 = vmul.f32 %v162_v27, %v3764_v15  ;;  %v458_v53 = vunpack.c.l.s4 %v3705_v52  ;;  %v3890_v21 = vunpack.c.0.s8 %v482_v63 }
 0x11c   :  { %v146_v60 = vmul.f32 0.5, %v145_v54  ;;  %v181_v13 = vmul.f32 %v3487_v3, %v173_v2  ;;  %381 = vmatpush.bf16.msrb.mxu1 %v3182_v16 }
 0x11d   :  { %v167_v9 = vsub.f32 1.5, %v166_v0  ;;  %v183_v30 = vmul.f32 %v3487_v3, %v175_v28  ;;  %v3872_v57 = vunpack.c.0.s8 %v458_v53 }
 0x11e   :  { %v147_v1 = vsub.f32 1.5, %v146_v60 }
 0x11f   :  { %v168_v19 = vmul.f32 %v3794_v45, %v167_v9  ;;  %v191_v32 = vadd.f32 %v3488_v14, %v183_v30 }
 0x120   :  { %v148_v5 = vmul.f32 %v3499_v46, %v147_v1 }
 0x121   :  { %v172_v26 = vsel %vm171_vm11, %v3794_v45, %v168_v19 }
 0x122   :  { %v152_v11 = vsel %vm151_vm6, %v3499_v46, %v148_v5  ;;  %v176_v22 = vmul.f32 %v172_v26, %v3774_v23 }
 0x123   :  { %v174_v12 = vmul.f32 %v152_v11, %v3776_v24  ;;  %v189_v24 = vadd.f32 %v3488_v14, %v181_v13 }
 0x124   :  { %v184_v29 = vmul.f32 %v3487_v3, %v176_v22 }
 0x125   :  { %v182_v18 = vmul.f32 %v3487_v3, %v174_v12 }
 0x126   :  { %v192_v31 = vadd.f32 %v3488_v14, %v184_v29 }
 0x127   :  { %v190_v20 = vadd.f32 %v3488_v14, %v182_v18 }
 0x128   :  { %v194_v33 = vpack.c.bf16 %v192_v31, %v191_v32 }
 0x129   :  { %v193_v25 = vpack.c.bf16 %v190_v20, %v189_v24 }
 0x12b   :  { %363 = vmatmul.bf16.vlgmr.msra.gmra.mxu1 %v193_v25  ;;  %401 = vmatmul.bf16.vlgmr.msra.gmra.mxu2 %v193_v25 }
 0x13b   :  { %368 = vmatmul.bf16.gmra.mxu1 %v194_v33  ;;  %406 = vmatmul.bf16.gmra.mxu2 %v194_v33 }
 0x14b   :  { %382 = vmatmul.bf16.vlgmr.msrb.gmra.mxu1 %v193_v25 }
 0x15b   :  { %387 = vmatmul.bf16.gmra.mxu1 %v194_v33 }
 0x1a8   :  { %v3817_v34 = vpop.f32.mrf.mxu1 }
 0x1a9   :  { %v455_v60 = vrot.slane %v3817_v34, 4 }
 0x1ae   :  { %v3834_v39 = vpop.f32.mrf.mxu2 }
 0x1af   :  { %v1447_v4 = vrot.slane %v3834_v39, 4 }
 0x1b0   :  { %v3819_v35 = vpop.f32.mrf.mxu1 }
 0x1b1   :  { %v3387_v41 = vpack.i.bf16 %v3819_v35, %v3817_v34  ;;  %v511_v5 = vrot.slane %v3819_v35, 4 }
 0x1b6   :  { %v3846_v43 = vpop.f32.mrf.mxu2 }
 0x1b7   :  { %v3427_v46 = vpack.i.bf16 %v3846_v43, %v3834_v39  ;;  %v1503_v6 = vrot.slane %v3846_v43, 4 }
 0x1b8   :  { %v3821_v36 = vpop.f32.mrf.mxu1 }
 0x1be   :  { %v3855_v45 = vpop.f32.mrf.mxu2 }
 0x1bf   :  { %5323 = vst [vmem:[#allocation15_spill] sm:$0xff] %v3855_v45 }
 0x1c0   :  { %v3823_v37 = vpop.f32.mrf.mxu1 }
 0x1c1   :  { %v3412_v44 = vpack.i.bf16 %v3823_v37, %v3821_v36 }
 0x1c6   :  { %v3863_v47 = vpop.f32.mrf.mxu2 }
 0x1c7   :  { %5324 = vst [vmem:[#allocation16_spill] sm:$0xff] %v3863_v47  ;;  %v3867_v48 = vpack.i.bf16 %v3863_v47, %v3855_v45  ;;  %v5333_v47 = vrot.slane %v3821_v36, 4 }
 0x1c8   :  { %v3825_v23 = vpop.f32.mrf.mxu1 }
 0x1c9   :  { %5325 = vst [vmem:[#allocation17_spill] sm:$0xff] %v3867_v48  ;;  %v951_v13 = vrot.slane %v3825_v23, 4 }
 0x1d0   :  { %v3827_v15 = vpop.f32.mrf.mxu1 }
 0x1d1   :  { %v3377_v38 = vpack.i.bf16 %v3827_v15, %v3825_v23  ;;  %v1007_v14 = vrot.slane %v3827_v15, 4 }
 0x1d3   :  { %3378 = vrot.lane.b32.xlu1 %v3377_v38, %s3703_s2  ;;  %3373 = vrot.lane.b32.xlu0 %v3377_v38, %s3700_s19 }
 0x1d4   :  { %3368 = vrot.lane.b32.xlu2 %v3377_v38, %s3704_s21 }
 0x1d8   :  { %v3836_v40 = vpop.f32.mrf.mxu1 }
 0x1d9   :  { %v1063_v17 = vrot.slane %v3836_v40, 4 }
 0x1db   :  { %3388 = vrot.lane.b32.xlu0 %v3387_v41, %s3700_s19 }
 0x1dc   :  { %3383 = vrot.lane.b32.xlu2 %v3387_v41, %s3704_s21 }
 0x1e0   :  { %v3842_v10 = vpop.f32.mrf.mxu1 }
 0x1e1   :  { %v3407_v42 = vpack.i.bf16 %v3842_v10, %v3836_v40  ;;  %v1119_v18 = vrot.slane %v3842_v10, 4 }
 0x1e3   :  { %3408 = vrot.lane.b32.xlu0 %v3407_v42, %s3700_s19  ;;  %3398 = vrot.lane.b32.xlu1 %v3407_v42, %s3704_s21 }
 0x1e4   :  { %3393 = vrot.lane.b32.xlu2 %v3387_v41, %s3703_s2 }
 0x1eb   :  { %3413 = vrot.lane.b32.xlu0 %v3412_v44, %s3700_s19  ;;  %3403 = vrot.lane.b32.xlu1 %v3412_v44, %s3704_s21 }
 0x1ec   :  { %3418 = vrot.lane.b32.xlu2 %v3407_v42, %s3703_s2 }
 0x1f3   :  { %3428 = vrot.lane.b32.xlu0 %v3427_v46, %s3704_s21  ;;  %3438 = vrot.lane.b32.xlu1 %v3427_v46, %s3703_s2 }
 0x1f4   :  { %3423 = vrot.lane.b32.xlu2 %v3412_v44, %s3703_s2 }
 0x1fb   :  { %3443 = vrot.lane.b32.xlu1 %v3867_v48, %s3704_s21 }
 0x1fc   :  { %3433 = vrot.lane.b32.xlu2 %v3427_v46, %s3700_s19 }
 0x22e   :  { %v3369_v49 = vpop.permute.xlu2 %3368 }
 0x22f   :  { %v3371_v61 = vunpack.i.h.bf16 %v3369_v49  ;;  %v3370_v0 = vunpack.i.l.bf16 %v3369_v49 }
 0x231   :  { %v1019_v19 = vrot.slane %v3371_v61, 4  ;;  %v963_v24 = vrot.slane %v3370_v0, 4 }
 0x236   :  { %v3384_v50 = vpop.permute.xlu2 %3383 }
 0x237   :  { %v3385_v51 = vunpack.i.l.bf16 %v3384_v50  ;;  %v3386_v54 = vunpack.i.h.bf16 %v3384_v50 }
 0x239   :  { %v467_v56 = vrot.slane %v3385_v51, 4  ;;  %v523_v1 = vrot.slane %v3386_v54, 4 }
 0x23e   :  { %v3394_v55 = vpop.permute.xlu2 %3393 }
 0x23f   :  { %v3396_v58 = vunpack.i.h.bf16 %v3394_v55  ;;  %v3395_v59 = vunpack.i.l.bf16 %v3394_v55 }
 0x241   :  { %v465_v2 = vrot.slane %v3395_v59, 4  ;;  %v468_v3 = vsel %vm453_vm13, %v3395_v59, %v467_v56  ;;  %v521_v7 = vrot.slane %v3396_v58, 4  ;;  %v524_v12 = vsel %vm453_vm13, %v3396_v58, %v523_v1 }
 0x242   :  { %v3882_v11 = vperm.slane %v468_v3, %v3872_v57  ;;  %v3894_v27 = vperm.slane %v524_v12, %v3872_v57 }
 0x243   :  { %v466_v16 = vsel %vm453_vm13, %v465_v2, %v3385_v51  ;;  %v522_v26 = vsel %vm453_vm13, %v521_v7, %v3386_v54 }
 0x244   :  { %v3899_v30 = vperm.slane %v466_v16, %v3872_v57  ;;  %v489_v31 = vrot.slane %v3882_v11, 4 }
 0x245   :  { %v3379_v20 = vpop.permute.xlu1 %3378  ;;  %v3374_v25 = vpop.permute.xlu0 %3373 }
 0x246   :  { %v3381_v22 = vunpack.i.h.bf16 %v3379_v20  ;;  %v3380_v28 = vunpack.i.l.bf16 %v3379_v20  ;;  %v3896_v29 = vpop.permute.xlu2 %3418  ;;  %v3376_v32 = vunpack.i.h.bf16 %v3374_v25  ;;  %v3375_v33 = vunpack.i.l.bf16 %v3374_v25 }
 0x248   :  { %v1017_v38 = vrot.slane %v3381_v22, 4  ;;  %v961_v41 = vrot.slane %v3380_v28, 4  ;;  %v964_v42 = vsel %vm453_vm13, %v3380_v28, %v963_v24  ;;  %v1020_v44 = vsel %vm453_vm13, %v3381_v22, %v1019_v19 }
 0x249   :  { %v972_v46 = vperm.slane %v964_v42, %v3872_v57  ;;  %v1028_v49 = vperm.slane %v1020_v44, %v3872_v57  ;;  %v1005_v50 = vrot.slane %v3376_v32, 4  ;;  %v949_v51 = vrot.slane %v3375_v33, 4 }
 0x24a   :  { %v962_v52 = vsel %vm453_vm13, %v961_v41, %v3370_v0  ;;  %v1018_v53 = vsel %vm453_vm13, %v1017_v38, %v3371_v61  ;;  %v952_v54 = vsel %vm453_vm13, %v3375_v33, %v951_v13  ;;  %v1008_v55 = vsel %vm453_vm13, %v3376_v32, %v1007_v14 }
 0x24b   :  { %v968_v56 = vperm.slane %v962_v52, %v3872_v57  ;;  %v985_v58 = vrot.slane %v972_v46, 4  ;;  %v1024_v59 = vperm.slane %v1018_v53, %v3872_v57  ;;  %v1041_v62 = vrot.slane %v1028_v49, 4 }
 0x24c   :  { %v1006_v63 = vsel %vm453_vm13, %v1005_v50, %v3827_v15  ;;  %v950_v1 = vsel %vm453_vm13, %v949_v51, %v3825_v23  ;;  %v960_v0 = vperm.slane %v952_v54, %v3872_v57  ;;  %v1016_v61 = vperm.slane %v1008_v55, %v3872_v57 }
 0x24d   :  { %v973_v2 = vrot.slane %v968_v56, 4  ;;  %v1029_v3 = vrot.slane %v1024_v59, 4  ;;  %v1012_v7 = vperm.slane %v1006_v63, %v3872_v57  ;;  %v956_v12 = vperm.slane %v950_v1, %v3872_v57 }
 0x24e   :  { %v986_v13 = vsel %vm453_vm13, %v985_v58, %v960_v0  ;;  %v987_v14 = vrot.slane %v960_v0, 4  ;;  %v1042_v16 = vsel %vm453_vm13, %v1041_v62, %v1016_v61  ;;  %v1043_v19 = vrot.slane %v1016_v61, 4  ;;  %v3930_v33 = vpop.permute.xlu2 %3423 }
 0x24f   :  { %v1031_v15 = vrot.slane %v1012_v7, 4  ;;  %v974_v24 = vsel %vm453_vm13, %v973_v2, %v956_v12  ;;  %v975_v23 = vrot.slane %v956_v12, 4  ;;  %v992_v20 = vperm.slane %v986_v13, %v3890_v21  ;;  %v3389_v12 = vpop.permute.xlu0 %3388 }
 0x250   :  { %v3925_v25 = vperm.slane %v974_v24, %v3890_v21  ;;  %v988_v22 = vsel %vm453_vm13, %v972_v46, %v987_v14  ;;  %v1030_v28 = vsel %vm453_vm13, %v1029_v3, %v1012_v7  ;;  %v1044_v32 = vsel %vm453_vm13, %v1028_v49, %v1043_v19 }
 0x251   :  { %v3933_v38 = vperm.slane %v522_v26, %v3872_v57  ;;  %v976_v41 = vsel %vm453_vm13, %v968_v56, %v975_v23  ;;  %v996_v42 = vperm.slane %v988_v22, %v3890_v21  ;;  %v1032_v44 = vsel %vm453_vm13, %v1024_v59, %v1031_v15 }
 0x252   :  { %v545_v50 = vrot.slane %v3894_v27, 4  ;;  %v984_v51 = vperm.slane %v976_v41, %v3890_v21  ;;  %v3941_v46 = vperm.slane %v1030_v28, %v3890_v21  ;;  %v1040_v49 = vperm.slane %v1032_v44, %v3890_v21 }
 0x253   :  { %v1001_v52 = vrot.slane %v992_v20, 4  ;;  %v1003_v53 = vrot.slane %v996_v42, 4  ;;  %v1048_v26 = vperm.slane %v1042_v16, %v3890_v21  ;;  %v1052_v54 = vperm.slane %v1044_v32, %v3890_v21 }
 0x254   :  { %v997_v55 = vrot.slane %v3925_v25, 4  ;;  %v3947_v56 = vrot.slane %v984_v51, 4  ;;  %v1053_v58 = vrot.slane %v3941_v46, 4  ;;  %v3950_v59 = vrot.slane %v1040_v49, 4 }
 0x255   :  { %v477_v62 = vrot.slane %v3899_v30, 4  ;;  %v1004_v63 = vsel %vm453_vm13, 0.0, %v1003_v53  ;;  %v1057_v1 = vrot.slane %v1048_v26, 4  ;;  %v1059_v0 = vrot.slane %v1052_v54, 4 }
 0x256   :  { %v533_v61 = vrot.slane %v3933_v38, 4  ;;  %v3957_v2 = vsel %vm453_vm13, 0.0, %v3947_v56  ;;  %v1189_v3 = vrot.slane %v1004_v63, 4  ;;  %v3421_v7 = vunpack.i.h.bf16 %v3896_v29  ;;  %v3989_v54 = vpop.permute.xlu2 %3433 }
 0x257   :  { %v1002_v13 = vsel %vm453_vm13, 0.0, %v1001_v52  ;;  %v3963_v14 = vsel %vm453_vm13, 0.0, %v3950_v59  ;;  %v1060_v16 = vsel %vm453_vm13, 0.0, %v1059_v0  ;;  %v3420_v19 = vunpack.i.l.bf16 %v3896_v29  ;;  %v3409_v51 = vpop.permute.xlu0 %3408 }
 0x258   :  { %v3968_v15 = vsel %vm453_vm13, 0.0, %v997_v55  ;;  %v3971_v24 = vsel %vm453_vm13, 0.0, %v1053_v58  ;;  %v1058_v23 = vsel %vm453_vm13, 0.0, %v1057_v1  ;;  %v3975_v22 = vsel %vm453_vm13, %v1003_v53, %v992_v20 }
 0x259   :  { %v1243_v32 = vrot.slane %v1060_v16, 4  ;;  %v3391_v41 = vunpack.i.h.bf16 %v3389_v12  ;;  %v3390_v42 = vunpack.i.l.bf16 %v3389_v12  ;;  %v3979_v44 = vsel %vm453_vm13, %v1189_v3, %v1002_v13 }
 0x25a   :  { %v3983_v49 = vsel %vm453_vm13, %v1059_v0, %v1048_v26  ;;  %v3987_v52 = vrot.slane %v3421_v7, 4  ;;  %v3999_v26 = vrot.slane %v3420_v19, 4  ;;  %v5312_v0 = vunpack.i.h.bf16 %v3930_v33 }
 0x25b   :  { %v509_v20 = vrot.slane %v3391_v41, 4  ;;  %v512_v53 = vsel %vm453_vm13, %v3391_v41, %v511_v5  ;;  %v452_v55 = vrot.slane %v3390_v42, 4  ;;  %v456_v58 = vsel %vm453_vm13, %v3390_v42, %v455_v60 }
 0x25c   :  { %v520_v63 = vperm.slane %v512_v53, %v3872_v57  ;;  %v464_v1 = vperm.slane %v456_v58, %v3872_v57  ;;  %v4005_v3 = vsel %vm453_vm13, %v1243_v32, %v1058_v23  ;;  %v3436_v60 = vunpack.i.h.bf16 %v3989_v54 }
 0x25d   :  { %v510_v5 = vsel %vm453_vm13, %v509_v20, %v3819_v35  ;;  %v454_v12 = vsel %vm453_vm13, %v452_v55, %v3817_v34  ;;  %v5311_v32 = vunpack.i.l.bf16 %v3930_v33  ;;  %v3435_v35 = vunpack.i.l.bf16 %v3989_v54 }
 0x25e   :  { %v516_v13 = vperm.slane %v510_v5, %v3872_v57  ;;  %v547_v16 = vrot.slane %v520_v63, 4  ;;  %v460_v41 = vperm.slane %v454_v12, %v3872_v57  ;;  %v490_v42 = vsel %vm453_vm13, %v489_v31, %v464_v1 }
 0x25f   :  { %v491_v53 = vrot.slane %v464_v1, 4  ;;  %v496_v23 = vperm.slane %v490_v42, %v3890_v21  ;;  %v546_v31 = vsel %vm453_vm13, %v545_v50, %v520_v63  ;;  %v1501_v1 = vrot.slane %v3436_v60, 4 }
 0x260   :  { %v535_v20 = vrot.slane %v516_v13, 4  ;;  %v478_v34 = vsel %vm453_vm13, %v477_v62, %v460_v41  ;;  %v479_v55 = vrot.slane %v460_v41, 4  ;;  %v534_v58 = vsel %vm453_vm13, %v533_v61, %v516_v13 }
 0x261   :  { %v4023_v5 = vperm.slane %v478_v34, %v3890_v21  ;;  %v492_v12 = vsel %vm453_vm13, %v3882_v11, %v491_v53  ;;  %v548_v61 = vsel %vm453_vm13, %v3894_v27, %v547_v16  ;;  %v505_v41 = vrot.slane %v496_v23, 4 }
 0x262   :  { %v480_v54 = vsel %vm453_vm13, %v3899_v30, %v479_v55  ;;  %v500_v42 = vperm.slane %v492_v12, %v3890_v21  ;;  %v536_v62 = vsel %vm453_vm13, %v3933_v38, %v535_v20  ;;  %v4039_v11 = vperm.slane %v534_v58, %v3890_v21 }
 0x263   :  { %v488_v13 = vperm.slane %v480_v54, %v3890_v21  ;;  %v544_v50 = vperm.slane %v536_v62, %v3890_v21  ;;  %v552_v53 = vperm.slane %v546_v31, %v3890_v21  ;;  %v556_v30 = vperm.slane %v548_v61, %v3890_v21 }
 0x264   :  { %v507_v63 = vrot.slane %v500_v42, 4  ;;  %v4046_v34 = vrot.slane %v5312_v0, 4  ;;  %v1502_v16 = vsel %vm453_vm13, %v1501_v1, %v3846_v43  ;;  %v1504_v20 = vsel %vm453_vm13, %v3436_v60, %v1503_v6 }
 0x265   :  { %v4048_v38 = vrot.slane %v488_v13, 4  ;;  %v4050_v27 = vrot.slane %v544_v50, 4  ;;  %v501_v55 = vrot.slane %v4023_v5, 4  ;;  %v561_v12 = vrot.slane %v552_v53, 4 }
 0x266   :  { %v508_v58 = vsel %vm453_vm13, 0.0, %v507_v63  ;;  %v563_v31 = vrot.slane %v556_v30, 4  ;;  %v506_v54 = vsel %vm453_vm13, 0.0, %v505_v41  ;;  %v557_v42 = vrot.slane %v4039_v11, 4 }
 0x267   :  { %v688_v62 = vsel %vm453_vm13, %v507_v63, %v496_v23  ;;  %v693_v61 = vrot.slane %v508_v58, 4  ;;  %v4064_v1 = vsel %vm453_vm13, 0.0, %v4048_v38  ;;  %v4068_v43 = vsel %vm453_vm13, 0.0, %v4050_v27 }
 0x268   :  { %v564_v6 = vsel %vm453_vm13, 0.0, %v563_v31  ;;  %v4072_v60 = vperm.slane %v688_v62, %v3872_v57  ;;  %v742_v41 = vsel %vm453_vm13, %v563_v31, %v552_v53  ;;  %v4077_v23 = vperm.slane %v1502_v16, %v3872_v57 }
 0x269   :  { %v694_v13 = vsel %vm453_vm13, %v693_v61, %v506_v54  ;;  %v747_v50 = vrot.slane %v564_v6, 4  ;;  %v4080_v63 = vsel %vm453_vm13, 0.0, %v501_v55  ;;  %v562_v30 = vsel %vm453_vm13, 0.0, %v561_v12  ;;  %v3399_v54 = vpop.permute.xlu1 %3398 }
 0x26a   :  { %v4084_v58 = vperm.slane %v742_v41, %v3872_v57  ;;  %v4088_v62 = vrot.slane %v5311_v32, 4  ;;  %v4091_v53 = vsel %vm453_vm13, 0.0, %v557_v42  ;;  %v4097_v12 = vperm.slane %v694_v13, %v3872_v57 }
 0x26b   :  { %v748_v55 = vsel %vm453_vm13, %v747_v50, %v562_v30  ;;  %v4101_v6 = vperm.slane %v1504_v20, %v3872_v57  ;;  %v1445_v41 = vrot.slane %v3435_v35, 4  ;;  %v3411_v32 = vunpack.i.h.bf16 %v3409_v51 }
 0x26c   :  { %v3410_v42 = vunpack.i.l.bf16 %v3409_v51  ;;  %v3401_v0 = vunpack.i.h.bf16 %v3399_v54  ;;  %v4105_v16 = vperm.slane %v748_v55, %v3872_v57  ;;  %v1448_v13 = vsel %vm453_vm13, %v3435_v35, %v1447_v4 }
 0x26d   :  { %v3400_v50 = vunpack.i.l.bf16 %v3399_v54  ;;  %v1117_v30 = vrot.slane %v3411_v32, 4  ;;  %v1120_v51 = vsel %vm453_vm13, %v3411_v32, %v1119_v18  ;;  %v1446_v31 = vsel %vm453_vm13, %v1445_v41, %v3834_v39 }
 0x26e   :  { %v1061_v61 = vrot.slane %v3410_v42, 4  ;;  %v1064_v20 = vsel %vm453_vm13, %v3410_v42, %v1063_v17  ;;  %v1130_v4 = vsel %vm453_vm13, %v3987_v52, %v3401_v0  ;;  %v1131_v54 = vrot.slane %v3401_v0, 4 }
 0x26f   :  { %v1072_v28 = vperm.slane %v1064_v20, %v3872_v57  ;;  %v1118_v35 = vsel %vm453_vm13, %v1117_v30, %v3842_v10  ;;  %v1136_v42 = vperm.slane %v1130_v4, %v3872_v57  ;;  %v1128_v39 = vperm.slane %v1120_v51, %v3872_v57  ;;  %v3414_v4 = vpop.permute.xlu0 %3413 }
 0x270   :  { %v1062_v17 = vsel %vm453_vm13, %v1061_v61, %v3836_v40  ;;  %v1124_v18 = vperm.slane %v1118_v35, %v3872_v57  ;;  %v1132_v52 = vsel %vm453_vm13, %v3421_v7, %v1131_v54  ;;  %v1074_v10 = vsel %vm453_vm13, %v3999_v26, %v3400_v50 }
 0x271   :  { %v1068_v32 = vperm.slane %v1062_v17, %v3872_v57  ;;  %v1099_v55 = vrot.slane %v1072_v28, 4  ;;  %v1141_v41 = vrot.slane %v1136_v42, 4  ;;  %v1075_v30 = vrot.slane %v3400_v50, 4 }
 0x272   :  { %v1143_v40 = vrot.slane %v1124_v18, 4  ;;  %v1140_v61 = vperm.slane %v1132_v52, %v3872_v57  ;;  %v1080_v20 = vperm.slane %v1074_v10, %v3872_v57  ;;  %v4139_v35 = vperm.slane %v1446_v31, %v3872_v57 }
 0x273   :  { %v1087_v0 = vrot.slane %v1068_v32, 4  ;;  %v4142_v51 = vperm.slane %v1448_v13, %v3872_v57  ;;  %v1142_v7 = vsel %vm453_vm13, %v1141_v41, %v1124_v18  ;;  %v1076_v26 = vsel %vm453_vm13, %v3420_v19, %v1075_v30 }
 0x274   :  { %v1155_v50 = vrot.slane %v1128_v39, 4  ;;  %v1144_v17 = vsel %vm453_vm13, %v1136_v42, %v1143_v40  ;;  %v1153_v54 = vrot.slane %v1140_v61, 4  ;;  %v1084_v52 = vperm.slane %v1076_v26, %v3872_v57 }
 0x275   :  { %v1152_v10 = vperm.slane %v1144_v17, %v3890_v21  ;;  %v1085_v8 = vrot.slane %v1080_v20, 4  ;;  %v1088_v31 = vsel %vm453_vm13, %v1080_v20, %v1087_v0  ;;  %v3416_v9 = vunpack.i.h.bf16 %v3414_v4 }
 0x276   :  { %v4153_v13 = vperm.slane %v1142_v7, %v3890_v21  ;;  %v1096_v18 = vperm.slane %v1088_v31, %v3890_v21  ;;  %v1097_v29 = vrot.slane %v1084_v52, 4  ;;  %v1100_v19 = vsel %vm453_vm13, %v1084_v52, %v1099_v55 }
 0x277   :  { %v1167_v41 = vrot.slane %v1152_v10, 4  ;;  %v1086_v42 = vsel %vm453_vm13, %v1085_v8, %v1068_v32  ;;  %v1108_v30 = vperm.slane %v1100_v19, %v3890_v21  ;;  %v1154_v40 = vsel %vm453_vm13, %v1153_v54, %v1128_v39 }
 0x278   :  { %v4161_v26 = vperm.slane %v1086_v42, %v3890_v21  ;;  %v1098_v0 = vsel %vm453_vm13, %v1097_v29, %v1072_v28  ;;  %v1111_v20 = vrot.slane %v1096_v18, 4  ;;  %v1156_v7 = vsel %vm453_vm13, %v1140_v61, %v1155_v50  ;;  %v3404_v61 = vpop.permute.xlu1 %3403 }
 0x279   :  { %v4166_v17 = vsel %vm453_vm13, 0.0, %v1167_v41  ;;  %v4169_v55 = vperm.slane %v1098_v0, %v3890_v21  ;;  %v1115_v52 = vrot.slane %v1108_v30, 4  ;;  %v621_v8 = vrot.slane %v3416_v9, 4 }
 0x27a   :  { %5326 = vst [vmem:[#allocation18_spill] sm:$0xff] %v4166_v17  ;;  %v4174_v54 = vperm.slane %v1154_v40, %v3890_v21  ;;  %v5328_v28 = vrot.slane %v3823_v37, 4  ;;  %v4182_v31 = vsel %vm453_vm13, %v1167_v41, %v4153_v13  ;;  %v1164_v29 = vperm.slane %v1156_v7, %v3890_v21 }
 0x27b   :  { %5329 = vst [vmem:[#allocation20_spill] sm:$0xff] %v4182_v31  ;;  %v4188_v42 = vsel %vm453_vm13, 0.0, %v1111_v20  ;;  %v622_v40 = vsel %vm453_vm13, %v621_v8, %v3823_v37  ;;  %v3415_v0 = vunpack.i.l.bf16 %v3414_v4  ;;  %v4200_v7 = vsel %vm453_vm13, %v1111_v20, %v4161_v26 }
 0x27c   :  { %5327 = vst [vmem:[#allocation19_spill] sm:$0xff] %v4174_v54  ;;  %v624_v10 = vsel %vm453_vm13, %v3416_v9, %v5328_v28  ;;  %v4192_v9 = vsel %vm453_vm13, 0.0, %v1115_v52  ;;  %v3406_v28 = vunpack.i.h.bf16 %v3404_v61  ;;  %v628_v50 = vperm.slane %v622_v40, %v3872_v57 }
 0x27d   :  { %5330 = vst [vmem:[#allocation21_spill] sm:$0xff] %v4188_v42  ;;  %v632_v41 = vperm.slane %v624_v10, %v3872_v57  ;;  %v3405_v19 = vunpack.i.l.bf16 %v3404_v61  ;;  %v1171_v30 = vrot.slane %v1164_v29, 4  ;;  %v565_v32 = vrot.slane %v3415_v0, 4 }
 0x27e   :  { %5331 = vst [vmem:[#allocation22_spill] sm:$0xff] %v4192_v9  ;;  %v568_v37 = vsel %vm453_vm13, %v3415_v0, %v5333_v47  ;;  %v647_v8 = vrot.slane %v628_v50, 4  ;;  %v634_v10 = vsel %vm453_vm13, %v4046_v34, %v3406_v28  ;;  %v635_v18 = vrot.slane %v3406_v28, 4 }
 0x27f   :  { %5332 = vst [vmem:[#allocation23_spill] sm:$0xff] %v4200_v7  ;;  %v659_v4 = vrot.slane %v632_v41, 4  ;;  %v566_v20 = vsel %vm453_vm13, %v565_v32, %v3821_v36  ;;  %v640_v40 = vperm.slane %v634_v10, %v3872_v57  ;;  %v578_v61 = vsel %vm453_vm13, %v4088_v62, %v3405_v19 }
 0x280   :  { %v579_v29 = vrot.slane %v3405_v19, 4  ;;  %v572_v39 = vperm.slane %v566_v20, %v3872_v57  ;;  %v576_v45 = vperm.slane %v568_v37, %v3872_v57  ;;  %v5334_v47 = vunpack.i.h.bf16 %v3930_v33 }
 0x281   :  { %v584_v34 = vperm.slane %v578_v61, %v3872_v57  ;;  %v645_v48 = vrot.slane %v640_v40, 4  ;;  %v648_v36 = vsel %vm453_vm13, %v640_v40, %v647_v8  ;;  %v5335_v32 = vunpack.i.l.bf16 %v3930_v33 }
 0x282   :  { %v636_v0 = vsel %vm453_vm13, %v5334_v47, %v635_v18  ;;  %v591_v19 = vrot.slane %v572_v39, 4  ;;  %v656_v10 = vperm.slane %v648_v36, %v3890_v21  ;;  %v4229_v18 = vsel %vm453_vm13, %v1115_v52, %v4169_v55 }
 0x283   :  { %v644_v28 = vperm.slane %v636_v0, %v3872_v57  ;;  %v580_v62 = vsel %vm453_vm13, %v5335_v32, %v579_v29  ;;  %v589_v20 = vrot.slane %v584_v34, 4  ;;  %5336 = vst [vmem:[#allocation24_spill] sm:$0xff] %v4229_v18  ;;  %v646_v61 = vsel %vm453_vm13, %v645_v48, %v628_v50  ;;  %v3429_v32 = vpop.permute.xlu0 %3428 }
 0x284   :  { %v588_v37 = vperm.slane %v580_v62, %v3872_v57  ;;  %v603_v8 = vrot.slane %v576_v45, 4  ;;  %v671_v40 = vrot.slane %v656_v10, 4  ;;  %v652_v36 = vperm.slane %v646_v61, %v3890_v21 }
 0x285   :  { %v657_v47 = vrot.slane %v644_v28, 4  ;;  %v660_v0 = vsel %vm453_vm13, %v644_v28, %v659_v4  ;;  %v590_v29 = vsel %vm453_vm13, %v589_v20, %v572_v39  ;;  %v592_v17 = vsel %vm453_vm13, %v584_v34, %v591_v19 }
 0x286   :  { %v668_v33 = vperm.slane %v660_v0, %v3890_v21  ;;  %v601_v52 = vrot.slane %v588_v37, 4  ;;  %v672_v50 = vsel %vm453_vm13, 0.0, %v671_v40  ;;  %v596_v28 = vperm.slane %v590_v29, %v3890_v21 }
 0x287   :  { %v658_v62 = vsel %vm453_vm13, %v657_v47, %v632_v41  ;;  %v600_v10 = vperm.slane %v592_v17, %v3890_v21  ;;  %v3431_v20 = vunpack.i.h.bf16 %v3429_v32  ;;  %v4245_v61 = vsel %vm453_vm13, 0.0, %v1171_v30  ;;  %v3439_v17 = vpop.permute.xlu1 %3438 }
 0x288   :  { %v664_v48 = vperm.slane %v658_v62, %v3890_v21  ;;  %v675_v4 = vrot.slane %v668_v33, 4  ;;  %v602_v39 = vsel %vm453_vm13, %v601_v52, %v576_v45  ;;  %v4249_v41 = vsel %vm453_vm13, %v1171_v30, %v4174_v54 }
 0x289   :  { %5337 = vst [vmem:[#allocation25_spill] sm:$0xff] %v4249_v41  ;;  %v669_v47 = vrot.slane %v652_v36, 4  ;;  %v839_v0 = vsel %vm453_vm13, %v671_v40, %v652_v36  ;;  %v844_v33 = vrot.slane %v672_v50, 4  ;;  %v604_v29 = vsel %vm453_vm13, %v588_v37, %v603_v8 }
 0x28a   :  { %v673_v34 = vrot.slane %v664_v48, 4  ;;  %v676_v19 = vsel %vm453_vm13, 0.0, %v675_v4  ;;  %v850_v45 = vsel %vm453_vm13, %v675_v4, %v664_v48  ;;  %v608_v52 = vperm.slane %v602_v39, %v3890_v21 }
 0x28b   :  { %v855_v62 = vrot.slane %v676_v19, 4  ;;  %v612_v31 = vperm.slane %v604_v29, %v3890_v21  ;;  %v613_v41 = vrot.slane %v596_v28, 4  ;;  %v615_v9 = vrot.slane %v600_v10, 4 }
 0x28c   :  { %v674_v30 = vsel %vm453_vm13, 0.0, %v673_v34  ;;  %v1515_v18 = vrot.slane %v3431_v20, 4  ;;  %v617_v42 = vrot.slane %v608_v52, 4  ;;  %v3430_v54 = vunpack.i.l.bf16 %v3429_v32 }
 0x28d   :  { %v619_v7 = vrot.slane %v612_v31, 4  ;;  %v3441_v40 = vunpack.i.h.bf16 %v3439_v17  ;;  %v1351_v36 = vrot.slane %v4245_v61, 4  ;;  %v670_v37 = vsel %vm453_vm13, 0.0, %v669_v47 }
 0x28e   :  { %v4261_v8 = vperm.slane %v839_v0, %v3872_v57  ;;  %v3440_v48 = vunpack.i.l.bf16 %v3439_v17  ;;  %v4264_v50 = vsel %vm453_vm13, %v844_v33, %v670_v37  ;;  %v4267_v4 = vperm.slane %v850_v45, %v3872_v57 }
 0x28f   :  { %v4270_v10 = vsel %vm453_vm13, %v855_v62, %v674_v30  ;;  %v785_v31 = vsel %vm453_vm13, %v615_v9, %v596_v28  ;;  %v614_v32 = vsel %vm453_vm13, 0.0, %v613_v41  ;;  %v616_v39 = vsel %vm453_vm13, 0.0, %v615_v9 }
 0x290   :  { %v1459_v34 = vrot.slane %v3430_v54, 4  ;;  %v1513_v19 = vrot.slane %v3441_v40, 4  ;;  %v618_v47 = vsel %vm453_vm13, 0.0, %v617_v42  ;;  %v620_v0 = vsel %vm453_vm13, 0.0, %v619_v7 }
 0x291   :  { %v1516_v33 = vsel %vm453_vm13, %v3441_v40, %v1515_v18  ;;  %v1457_v29 = vrot.slane %v3440_v48, 4  ;;  %v4279_v17 = vperm.slane %v785_v31, %v3872_v57  ;;  %v790_v62 = vrot.slane %v616_v39, 4 }
 0x292   :  { %v1514_v45 = vsel %vm453_vm13, %v1513_v19, %v3431_v20  ;;  %v1524_v28 = vperm.slane %v1516_v33, %v3872_v57  ;;  %v1460_v41 = vsel %vm453_vm13, %v3440_v48, %v1459_v34  ;;  %v796_v37 = vsel %vm453_vm13, %v619_v7, %v608_v52 }
 0x293   :  { %v1520_v9 = vperm.slane %v1514_v45, %v3872_v57  ;;  %v1458_v30 = vsel %vm453_vm13, %v1457_v29, %v3430_v54  ;;  %v1468_v42 = vperm.slane %v1460_v41, %v3872_v57  ;;  %v5338_v40 = vrot.slane %v4101_v6, 4 }
 0x294   :  { %v1537_v18 = vrot.slane %v1524_v28, 4  ;;  %v1464_v20 = vperm.slane %v1458_v30, %v3872_v57  ;;  %v5339_v33 = vrot.slane %v4077_v23, 4  ;;  %v5340_v29 = vrot.slane %v4139_v35, 4 }
 0x295   :  { %v1540_v31 = vsel %vm453_vm13, %v1524_v28, %v5338_v40  ;;  %v1525_v19 = vrot.slane %v1520_v9, 4  ;;  %v1481_v34 = vrot.slane %v1468_v42, 4  ;;  %v801_v28 = vrot.slane %v620_v0, 4 }
 0x296   :  { %v1528_v48 = vsel %vm453_vm13, %v1520_v9, %v5339_v33  ;;  %v1548_v39 = vperm.slane %v1540_v31, %v3890_v21  ;;  %v1538_v7 = vsel %vm453_vm13, %v1537_v18, %v4101_v6  ;;  %v1469_v52 = vrot.slane %v1464_v20, 4 }
 0x297   :  { %v1536_v54 = vperm.slane %v1528_v48, %v3890_v21  ;;  %v1472_v45 = vsel %vm453_vm13, %v1464_v20, %v5340_v29  ;;  %v1526_v41 = vsel %vm453_vm13, %v1525_v19, %v4077_v23  ;;  %v1544_v30 = vperm.slane %v1538_v7, %v3890_v21 }
 0x298   :  { %v1555_v9 = vrot.slane %v1548_v39, 4  ;;  %v1532_v40 = vperm.slane %v1526_v41, %v3890_v21  ;;  %v1470_v33 = vsel %vm453_vm13, %v1469_v52, %v4139_v35  ;;  %v1480_v6 = vperm.slane %v1472_v45, %v3890_v21 }
 0x299   :  { %v1551_v31 = vrot.slane %v1536_v54, 4  ;;  %v1553_v18 = vrot.slane %v1544_v30, 4  ;;  %v1482_v0 = vsel %vm453_vm13, %v1481_v34, %v4142_v51  ;;  %v4314_v23 = vsel %vm453_vm13, %v790_v62, %v614_v32 }
 0x29a   :  { %v1556_v48 = vsel %vm453_vm13, 0.0, %v1555_v9  ;;  %v1734_v20 = vsel %vm453_vm13, %v1555_v9, %v1544_v30  ;;  %v4317_v19 = vperm.slane %v796_v37, %v3872_v57  ;;  %v1476_v39 = vperm.slane %v1470_v33, %v3890_v21 }
 0x29b   :  { %v1173_v35 = vsel %vm453_vm13, %v3947_v56, %v3925_v25  ;;  %v1549_v54 = vrot.slane %v1532_v40, 4  ;;  %v4324_v7 = vsel %vm453_vm13, 0.0, %v1551_v31  ;;  %v1554_v52 = vsel %vm453_vm13, 0.0, %v1553_v18 }
 0x29c   :  { %v1739_v29 = vrot.slane %v1556_v48, 4  ;;  %v1723_v34 = vsel %vm453_vm13, %v1551_v31, %v1532_v40  ;;  %v4329_v32 = vperm.slane %v1734_v20, %v3872_v57  ;;  %v5341_v62 = vrot.slane %v4142_v51, 4 }
 0x29d   :  { %v1488_v45 = vperm.slane %v1482_v0, %v3890_v21  ;;  %v4336_v25 = vsel %vm453_vm13, %v801_v28, %v618_v47  ;;  %v1495_v30 = vrot.slane %v1480_v6, 4  ;;  %v1493_v9 = vrot.slane %v1476_v39, 4 }
 0x29e   :  { %v1484_v37 = vsel %vm453_vm13, %v1468_v42, %v5341_v62  ;;  %v1740_v56 = vsel %vm453_vm13, %v1739_v29, %v1554_v52  ;;  %v4341_v40 = vperm.slane %v1173_v35, %v3872_v57  ;;  %v5342_v51 = vrot.slane %v3957_v2, 4 }
 0x29f   :  { %v1492_v41 = vperm.slane %v1484_v37, %v3890_v21  ;;  %v1497_v33 = vrot.slane %v1488_v45, 4  ;;  %v4348_v31 = vsel %vm453_vm13, 0.0, %v1549_v54  ;;  %v4351_v47 = vperm.slane %v1723_v34, %v3872_v57 }
 0x2a0   :  { %v1179_v42 = vsel %vm453_vm13, %v5342_v51, %v3968_v15  ;;  %v4355_v6 = vperm.slane %v1740_v56, %v3872_v57  ;;  %v1669_v20 = vsel %vm453_vm13, %v1495_v30, %v1476_v39  ;;  %v4367_v54 = vperm.slane %v3979_v44, %v3872_v57 }
 0x2a1   :  { %v1499_v18 = vrot.slane %v1492_v41, 4  ;;  %v4360_v2 = vperm.slane %v1179_v42, %v3872_v57  ;;  %v1498_v15 = vsel %vm453_vm13, 0.0, %v1497_v33  ;;  %v4370_v52 = vsel %vm453_vm13, 0.0, %v1493_v9 }
 0x2a2   :  { %v4374_v39 = vperm.slane %v3975_v22, %v3872_v57  ;;  %v4378_v62 = vsel %vm453_vm13, 0.0, %v1495_v30  ;;  %v1207_v37 = vrot.slane %v4367_v54, 4  ;;  %v1227_v44 = vsel %vm453_vm13, %v3950_v59, %v3941_v46 }
 0x2a3   :  { %v1500_v0 = vsel %vm453_vm13, 0.0, %v1499_v18  ;;  %v1680_v35 = vsel %vm453_vm13, %v1499_v18, %v1488_v45  ;;  %v1195_v34 = vrot.slane %v4360_v2, 4  ;;  %v5343_v45 = vrot.slane %v3963_v14, 4 }
 0x2a4   :  { %v1685_v29 = vrot.slane %v1500_v0, 4  ;;  %v4389_v41 = vperm.slane %v1669_v20, %v3872_v57  ;;  %v4392_v22 = vperm.slane %v1680_v35, %v3872_v57  ;;  %v1208_v46 = vsel %vm453_vm13, %v1207_v37, %v4374_v39 }
 0x2a5   :  { %v1233_v56 = vsel %vm453_vm13, %v5343_v45, %v3971_v24  ;;  %v1196_v9 = vsel %vm453_vm13, %v1195_v34, %v4341_v40  ;;  %v4401_v59 = vperm.slane %v1227_v44, %v3872_v57  ;;  %v1674_v24 = vrot.slane %v4378_v62, 4 }
 0x2a6   :  { %v1686_v30 = vsel %vm453_vm13, %v1685_v29, %v1498_v15  ;;  %v1202_v33 = vperm.slane %v1196_v9, %v3890_v21  ;;  %v4404_v14 = vperm.slane %v1233_v56, %v3872_v57  ;;  %v1197_v51 = vrot.slane %v4341_v40, 4 }
 0x2a7   :  { %v1214_v42 = vperm.slane %v1208_v46, %v3890_v21  ;;  %v4411_v18 = vperm.slane %v4005_v3, %v3872_v57  ;;  %v1209_v20 = vrot.slane %v4374_v39, 4  ;;  %v4416_v15 = vperm.slane %v3983_v49, %v3872_v57 }
 0x2a8   :  { %v1249_v0 = vrot.slane %v4404_v14, 4  ;;  %v1221_v35 = vrot.slane %v1202_v33, 4  ;;  %v4420_v29 = vperm.slane %v1686_v30, %v3872_v57  ;;  %v1251_v39 = vrot.slane %v4401_v59, 4 }
 0x2a9   :  { %v1219_v34 = vrot.slane %v1214_v42, 4  ;;  %v1261_v37 = vrot.slane %v4411_v18, 4  ;;  %v677_v49 = vsel %vm453_vm13, %v4048_v38, %v4023_v5  ;;  %v1263_v46 = vrot.slane %v4416_v15, 4 }
 0x2aa   :  { %v1250_v3 = vsel %vm453_vm13, %v1249_v0, %v4401_v59  ;;  %v1222_v44 = vsel %vm453_vm13, %v1214_v42, %v1221_v35  ;;  %v5344_v59 = vrot.slane %v4064_v1, 4  ;;  %v4442_v38 = vperm.slane %v677_v49, %v3872_v57 }
 0x2ab   :  { %v1220_v45 = vsel %vm453_vm13, %v1219_v34, %v1202_v33  ;;  %v1256_v56 = vperm.slane %v1250_v3, %v3890_v21  ;;  %v1262_v30 = vsel %vm453_vm13, %v1261_v37, %v4416_v15  ;;  %v1391_v9 = vpack.c.bf16 %v1222_v44, %v1222_v44 }
 0x2ac   :  { %v1268_v0 = vperm.slane %v1262_v30, %v3890_v21  ;;  %v1389_v48 = vpack.c.bf16 %v1220_v45, %v1220_v45  ;;  %v683_v42 = vsel %vm453_vm13, %v5344_v59, %v4080_v63  ;;  %v711_v15 = vrot.slane %v4097_v12, 4 }
 0x2ad   :  { %v1275_v5 = vrot.slane %v1256_v56, 4  ;;  %v4445_v33 = vperm.slane %v683_v42, %v3872_v57  ;;  %v1939_v34 = vunpack.c.l.b16 %v1391_v9  ;;  %v731_v37 = vsel %vm453_vm13, %v4050_v27, %v4039_v11 }
 0x2ae   :  { %v1273_v35 = vrot.slane %v1268_v0, 4  ;;  %v1908_v3 = vunpack.c.l.b16 %v1389_v48  ;;  %v5345_v44 = vrot.slane %v4068_v43, 4  ;;  %v712_v9 = vsel %vm453_vm13, %v711_v15, %v4072_v60 }
 0x2af   :  { %v1276_v1 = vsel %vm453_vm13, %v1268_v0, %v1275_v5  ;;  %v699_v63 = vrot.slane %v4445_v33, 4  ;;  %v4466_v48 = vperm.slane %v712_v9, %v3890_v21  ;;  %v4469_v43 = vperm.slane %v731_v37, %v3872_v57 }
 0x2b0   :  { %v737_v49 = vsel %vm453_vm13, %v5345_v44, %v4091_v53  ;;  %v1274_v45 = vsel %vm453_vm13, %v1273_v35, %v1256_v56  ;;  %v1392_v30 = vpack.c.bf16 %v1276_v1, %v1276_v1  ;;  %v765_v42 = vrot.slane %v4105_v16, 4 }
 0x2b1   :  { %v4461_v59 = vperm.slane %v737_v49, %v3872_v57  ;;  %v1390_v11 = vpack.c.bf16 %v1274_v45, %v1274_v45  ;;  %v700_v27 = vsel %vm453_vm13, %v699_v63, %v4442_v38  ;;  %v723_v35 = vrot.slane %v4466_v48, 4 }
 0x2b2   :  { %v1940_v53 = vunpack.c.l.b16 %v1392_v30  ;;  %v4472_v56 = vperm.slane %v700_v27, %v3890_v21  ;;  %v1198_v15 = vsel %vm453_vm13, %v4360_v2, %v1197_v51  ;;  %v1210_v1 = vsel %vm453_vm13, %v4367_v54, %v1209_v20 }
 0x2b3   :  { %v753_v0 = vrot.slane %v4461_v59, 4  ;;  %v1909_v5 = vunpack.c.l.b16 %v1390_v11  ;;  %v766_v49 = vsel %vm453_vm13, %v765_v42, %v4084_v58  ;;  %v4496_v20 = vperm.slane %v1198_v15, %v3890_v21 }
 0x2b4   :  { %v1941_v63 = vpack.c.b16 %v1940_v53, %v1939_v34  ;;  %v724_v30 = vsel %vm453_vm13, %v723_v35, %v4472_v56  ;;  %v4492_v2 = vperm.slane %v766_v49, %v3890_v21  ;;  %v4499_v34 = vperm.slane %v1210_v1, %v3890_v21 }
 0x2b5   :  { %v754_v44 = vsel %vm453_vm13, %v753_v0, %v4469_v43  ;;  %v1910_v45 = vpack.c.b16 %v1909_v5, %v1908_v3  ;;  %v893_v51 = vpack.c.bf16 %v724_v30, %v724_v30  ;;  %v1252_v53 = vsel %vm453_vm13, %v4404_v14, %v1251_v39  ;;  %v5349_v30 = vld [vmem:[#allocation19_spill] sm:$0xff] }
 0x2b6   :  { %v4489_v9 = vperm.slane %v754_v44, %v3890_v21  ;;  %v1946_v54 = vsel %vm1911_vm14, %v1941_v63, 0  ;;  %v777_v27 = vrot.slane %v4492_v2, 4  ;;  %v1223_v42 = vrot.slane %v4499_v34, 4 }
 0x2b7   :  { %v1916_v3 = vsel %vm1911_vm14, %v1910_v45, 0  ;;  %v1903_v0 = vunpack.c.l.b16 %v893_v51  ;;  %v4508_v5 = vperm.slane %v1252_v53, %v3890_v21  ;;  %v1264_v35 = vsel %vm453_vm13, %v4411_v18, %v1263_v46  ;;  %v5352_v53 = vld [vmem:[#allocation21_spill] sm:$0xff] }
 0x2b8   :  { %1925 = vmatpush.bf16.xpose.msra.mxu3 %v1916_v3  ;;  %v778_v15 = vsel %vm453_vm13, %v777_v27, %v4489_v9  ;;  %v4515_v1 = vperm.slane %v1264_v35, %v3890_v21  ;;  %v5346_v63 = vrot.slane %v4161_v26, 4  ;;  %v5347_v39 = vrot.slane %v4169_v55, 4  ;;  %v5351_v27 = vld [vmem:[#allocation23_spill] sm:$0xff] }
 0x2b9   :  { %v894_v49 = vpack.c.bf16 %v778_v15, %v778_v15  ;;  %v1224_v45 = vsel %vm453_vm13, %v1223_v42, %v4496_v20  ;;  %v5348_v18 = vrot.slane %v4153_v13, 4  ;;  %v1285_v55 = vperm.slane %v5351_v27, %v3872_v57  ;;  %v5354_v13 = vld [vmem:[#allocation24_spill] sm:$0xff] }
 0x2ba   :  { %v1110_v14 = vsel %vm453_vm13, 0.0, %v5346_v63  ;;  %v1114_v44 = vsel %vm453_vm13, 0.0, %v5347_v39  ;;  %v1277_v26 = vrot.slane %v4515_v1, 4  ;;  %v1393_v3 = vpack.c.bf16 %v1224_v45, %v1224_v45 }
 0x2bb   :  { %v1166_v46 = vsel %vm453_vm13, 0.0, %v5348_v18  ;;  %v5353_v35 = vrot.slane %v5352_v53, 4  ;;  %v1904_v63 = vunpack.c.l.b16 %v894_v49  ;;  %v1296_v39 = vperm.slane %v5354_v13, %v3872_v57  ;;  %v5355_v18 = vld [vmem:[#allocation22_spill] sm:$0xff]  ;;  %v5357_v49 = vld [vmem:[#allocation20_spill] sm:$0xff] }
 0x2bc   :  { %v1278_v45 = vsel %vm453_vm13, %v1277_v26, %v4508_v5  ;;  %v1969_v11 = vunpack.c.l.b16 %v1393_v3  ;;  %v1305_v37 = vrot.slane %v1285_v55, 4  ;;  %v5358_v13 = vld [vmem:[#allocation18_spill] sm:$0xff]  ;;  %v725_v61 = vrot.slane %v4472_v56, 4 }
 0x2bd   :  { %v1287_v15 = vsel %vm453_vm13, %v5353_v35, %v1110_v14  ;;  %v1905_v53 = vpack.c.b16 %v1904_v63, %v1903_v0  ;;  %v1394_v28 = vpack.c.bf16 %v1278_v45, %v1278_v45  ;;  %v1317_v14 = vrot.slane %v1296_v39, 4 }
 0x2be   :  { %v1291_v42 = vperm.slane %v1287_v15, %v3872_v57  ;;  %v1339_v35 = vperm.slane %v5357_v49, %v3872_v57  ;;  %v5359_v40 = vrot.slane %v5358_v13, 4 }
 0x2bf   :  { %3271 = vmatmul.msk.bf16.vlgmr.msra.gmra.mxu3 %vm1911_vm14, %v1905_v53  ;;  %v1970_v0 = vunpack.c.l.b16 %v1394_v28 }
 0x2c0   :  { %1955 = vmatpush.bf16.xpose.msrb.mxu3 %v1946_v54  ;;  %v5350_v54 = vrot.slane %v5349_v30, 4  ;;  %v5356_v30 = vrot.slane %v5355_v18, 4  ;;  %v1306_v15 = vsel %vm453_vm13, %v1291_v42, %v1305_v37  ;;  %v1341_v18 = vsel %vm453_vm13, %v5359_v40, %v1166_v46 }
 0x2c1   :  { %v4559_v3 = vperm.slane %v1306_v15, %v3890_v21  ;;  %v1345_v37 = vperm.slane %v1341_v18, %v3872_v57  ;;  %v1359_v46 = vrot.slane %v1339_v35, 4 }
 0x2c2   :  { %v1170_v51 = vsel %vm453_vm13, 0.0, %v5350_v54  ;;  %v1298_v54 = vsel %vm453_vm13, %v5356_v30, %v1114_v44  ;;  %v5360_v44 = vld [vmem:[#allocation25_spill] sm:$0xff] }
 0x2c3   :  { %v1302_v27 = vperm.slane %v1298_v54, %v3872_v57  ;;  %v1350_v30 = vperm.slane %v5360_v44, %v3872_v57  ;;  %v1352_v26 = vsel %vm453_vm13, %v1351_v36, %v1170_v51  ;;  %v1971_v36 = vpack.c.b16 %v1970_v0, %v1969_v11 }
 0x2c4   :  { %v1356_v40 = vperm.slane %v1352_v26, %v3872_v57  ;;  %v1303_v51 = vrot.slane %v1291_v42, 4  ;;  %v1360_v49 = vsel %vm453_vm13, %v1345_v37, %v1359_v46  ;;  %v1357_v15 = vrot.slane %v1345_v37, 4 }
 0x2c5   :  { %v1318_v63 = vsel %vm453_vm13, %v1302_v27, %v1317_v14  ;;  %v1371_v45 = vrot.slane %v1350_v30, 4  ;;  %v1315_v53 = vrot.slane %v1302_v27, 4  ;;  %v1976_v13 = vsel %vm1911_vm14, %v1971_v36, 0 }
 0x2c6   :  { %v4564_v54 = vperm.slane %v1318_v63, %v3890_v21  ;;  %v4573_v18 = vperm.slane %v1360_v49, %v3890_v21  ;;  %v1304_v56 = vsel %vm453_vm13, %v1303_v51, %v1285_v55  ;;  %v1358_v26 = vsel %vm453_vm13, %v1357_v15, %v1339_v35 }
 0x2c7   :  { %v1372_v14 = vsel %vm453_vm13, %v1356_v40, %v1371_v45  ;;  %v1310_v42 = vperm.slane %v1304_v56, %v3890_v21  ;;  %v1316_v27 = vsel %vm453_vm13, %v1315_v53, %v1296_v39  ;;  %v779_v0 = vrot.slane %v4489_v9, 4 }
 0x2c8   :  { %v1331_v28 = vrot.slane %v4564_v54, 4  ;;  %v4576_v44 = vperm.slane %v1372_v14, %v3890_v21  ;;  %1985 = vmatpush.bf16.xpose.msra.mxu3 %v1976_v13  ;;  %v1322_v46 = vperm.slane %v1316_v27, %v3890_v21  ;;  %v1364_v45 = vperm.slane %v1358_v26, %v3890_v21 }
 0x2c9   :  { %v1369_v55 = vrot.slane %v1356_v40, 4  ;;  %v1329_v36 = vrot.slane %v1310_v42, 4  ;;  %v4590_v51 = vperm.slane %v4314_v23, %v3872_v57  ;;  %v4596_v9 = vperm.slane %v4336_v25, %v3872_v57 }
 0x2ca   :  { %v1332_v11 = vsel %vm453_vm13, %v1331_v28, %v4559_v3  ;;  %v1385_v63 = vrot.slane %v4576_v44, 4  ;;  %v1327_v35 = vrot.slane %v1322_v46, 4  ;;  %v1383_v40 = vrot.slane %v1364_v45, 4 }
 0x2cb   :  { %v1401_v37 = vpack.c.bf16 %v1332_v11, %v1332_v11  ;;  %v1370_v49 = vsel %vm453_vm13, %v1369_v55, %v1350_v30  ;;  %v1330_v14 = vsel %vm453_vm13, %v1322_v46, %v1329_v36  ;;  %v809_v56 = vrot.slane %v4279_v17, 4 }
 0x2cc   :  { %v1386_v39 = vsel %vm453_vm13, %v1385_v63, %v4573_v18  ;;  %v1328_v15 = vsel %vm453_vm13, %v1327_v35, %v1310_v42  ;;  %v1376_v23 = vperm.slane %v1370_v49, %v3890_v21  ;;  %v1399_v13 = vpack.c.bf16 %v1330_v14, %v1330_v14 }
 0x2cd   :  { %v2089_v53 = vunpack.c.l.b16 %v1401_v37  ;;  %v1402_v28 = vpack.c.bf16 %v1386_v39, %v1386_v39  ;;  %v1397_v27 = vpack.c.bf16 %v1328_v15, %v1328_v15  ;;  %v821_v26 = vrot.slane %v4317_v19, 4 }
 0x2ce   :  { %v849_v25 = vperm.slane %v4264_v50, %v3872_v57  ;;  %v1381_v63 = vrot.slane %v1376_v23, 4  ;;  %v1384_v30 = vsel %vm453_vm13, %v1376_v23, %v1383_v40  ;;  %v2059_v37 = vunpack.c.l.b16 %v1399_v13 }
 0x2cf   :  { %v2090_v11 = vunpack.c.l.b16 %v1402_v28  ;;  %v810_v46 = vsel %vm453_vm13, %v4590_v51, %v809_v56  ;;  %v2029_v55 = vunpack.c.l.b16 %v1397_v27  ;;  %v1400_v36 = vpack.c.bf16 %v1384_v30, %v1384_v30 }
 0x2d0   :  { %v4610_v39 = vperm.slane %v810_v46, %v3890_v21  ;;  %v1382_v35 = vsel %vm453_vm13, %v1381_v63, %v1364_v45  ;;  %v822_v28 = vsel %vm453_vm13, %v4596_v9, %v821_v26  ;;  %v860_v50 = vperm.slane %v4270_v10, %v3872_v57 }
 0x2d1   :  { %v2091_v42 = vpack.c.b16 %v2090_v11, %v2089_v53  ;;  %v863_v49 = vrot.slane %v4261_v8, 4  ;;  %v1398_v40 = vpack.c.bf16 %v1382_v35, %v1382_v35  ;;  %v2060_v15 = vunpack.c.l.b16 %v1400_v36 }
 0x2d2   :  { %v4620_v53 = vperm.slane %v822_v28, %v3890_v21  ;;  %v1333_v23 = vrot.slane %v4559_v3, 4  ;;  %v875_v13 = vrot.slane %v4267_v4, 4  ;;  %v726_v56 = vsel %vm453_vm13, %v4466_v48, %v725_v61 }
 0x2d3   :  { %v2096_v14 = vsel %vm1911_vm14, %v2091_v42, 0  ;;  %v864_v45 = vsel %vm453_vm13, %v849_v25, %v863_v49  ;;  %v1387_v10 = vrot.slane %v4573_v18, 4  ;;  %v2030_v11 = vunpack.c.l.b16 %v1398_v40 }
 0x2d4   :  { %2105 = vmatpush.bf16.xpose.msrb.mxu2 %v2096_v14  ;;  %v2061_v27 = vpack.c.b16 %v2060_v15, %v2059_v37  ;;  %v835_v26 = vrot.slane %v4620_v53, 4  ;;  %v876_v63 = vsel %vm453_vm13, %v860_v50, %v875_v13  ;;  %v780_v30 = vsel %vm453_vm13, %v4492_v2, %v779_v0 }
 0x2d5   :  { %v895_v46 = vpack.c.bf16 %v726_v56, %v726_v56  ;;  %v1225_v42 = vrot.slane %v4496_v20, 4  ;;  %v2031_v36 = vpack.c.b16 %v2030_v11, %v2029_v55  ;;  %v4636_v48 = vperm.slane %v864_v45, %v3890_v21 }
 0x2d6   :  { %v836_v35 = vsel %vm453_vm13, %v835_v26, %v4610_v39  ;;  %v4639_v61 = vperm.slane %v876_v63, %v3890_v21  ;;  %v2066_v37 = vsel %vm1911_vm14, %v2061_v27, 0  ;;  %v896_v49 = vpack.c.bf16 %v780_v30, %v780_v30 }
 0x2d7   :  { %v905_v28 = vpack.c.bf16 %v836_v35, %v836_v35  ;;  %v1934_v14 = vunpack.c.l.b16 %v895_v46  ;;  %v2036_v2 = vsel %vm1911_vm14, %v2031_v36, 0  ;;  %v1226_v20 = vsel %vm453_vm13, %v4499_v34, %v1225_v42 }
 0x2d8   :  { %v889_v0 = vrot.slane %v4639_v61, 4  ;;  %v1279_v55 = vrot.slane %v4508_v5, 4  ;;  %2045 = vmatpush.bf16.xpose.msra.mxu0 %v2036_v2  ;;  %v1935_v15 = vunpack.c.l.b16 %v896_v49  ;;  %v1395_v45 = vpack.c.bf16 %v1226_v20, %v1226_v20 }
 0x2d9   :  { %v2084_v40 = vunpack.c.l.b16 %v905_v28  ;;  %v807_v13 = vrot.slane %v4590_v51, 4  ;;  %v819_v27 = vrot.slane %v4596_v9, 4  ;;  %v861_v26 = vrot.slane %v849_v25, 4 }
 0x2da   :  { %v890_v56 = vsel %vm453_vm13, %v889_v0, %v4636_v48  ;;  %v1280_v11 = vsel %vm453_vm13, %v4515_v1, %v1279_v55  ;;  %v1936_v34 = vpack.c.b16 %v1935_v15, %v1934_v14  ;;  %v1999_v5 = vunpack.c.l.b16 %v1395_v45 }
 0x2db   :  { %v906_v63 = vpack.c.bf16 %v890_v56, %v890_v56  ;;  %v1396_v30 = vpack.c.bf16 %v1280_v11, %v1280_v11  ;;  %v808_v46 = vsel %vm453_vm13, %v807_v13, %v4279_v17  ;;  %v820_v51 = vsel %vm453_vm13, %v819_v27, %v4317_v19 }
 0x2dc   :  { %v862_v42 = vsel %vm453_vm13, %v861_v26, %v4261_v8  ;;  %v873_v36 = vrot.slane %v860_v50, 4  ;;  %3272 = vmatmul.msk.bf16.vlgmr.msrb.gmra.mxu3 %vm1911_vm14, %v1936_v34  ;;  %v4661_v9 = vperm.slane %v808_v46, %v3890_v21  ;;  %v4664_v25 = vperm.slane %v820_v51, %v3890_v21 }
 0x2dd   :  { %v2085_v35 = vunpack.c.l.b16 %v906_v63  ;;  %v2000_v1 = vunpack.c.l.b16 %v1396_v30  ;;  %v1675_v8 = vsel %vm453_vm13, %v1674_v24, %v4370_v52  ;;  %v1693_v19 = vrot.slane %v4389_v41, 4 }
 0x2de   :  { %v874_v17 = vsel %vm453_vm13, %v873_v36, %v4267_v4  ;;  %v831_v49 = vrot.slane %v4664_v25, 4  ;;  %v833_v14 = vrot.slane %v4661_v9, 4  ;;  %v1679_v4 = vperm.slane %v1675_v8, %v3872_v57 }
 0x2df   :  { %v2086_v50 = vpack.c.b16 %v2085_v35, %v2084_v40  ;;  %v2001_v28 = vpack.c.b16 %v2000_v1, %v1999_v5  ;;  %v4679_v2 = vperm.slane %v874_v17, %v3890_v21  ;;  %v5361_v20 = vrot.slane %v4392_v22, 4 }
 0x2e0   :  { %2075 = vmatpush.bf16.xpose.msrb.mxu0 %v2066_v37  ;;  %v4667_v37 = vperm.slane %v862_v42, %v3890_v21  ;;  %v832_v24 = vsel %vm453_vm13, %v831_v49, %v4661_v9  ;;  %v5362_v40 = vrot.slane %v4324_v7, 4  ;;  %v1694_v56 = vsel %vm453_vm13, %v1679_v4, %v1693_v19 }
 0x2e1   :  { %v1706_v52 = vsel %vm453_vm13, %v4420_v29, %v5361_v20  ;;  %3277 = vmatmul.msk.bf16.vlgmr.msrb.gmra.mxu2 %vm1911_vm14, %v2086_v50  ;;  %v2006_v62 = vsel %vm1911_vm14, %v2001_v28, 0  ;;  %v885_v45 = vrot.slane %v4679_v2, 4  ;;  %v901_v13 = vpack.c.bf16 %v832_v24, %v832_v24 }
 0x2e2   :  { %v887_v0 = vrot.slane %v4667_v37, 4  ;;  %v4692_v55 = vperm.slane %v1706_v52, %v3890_v21  ;;  %v1729_v15 = vsel %vm453_vm13, %v5362_v40, %v4348_v31  ;;  %2015 = vmatpush.bf16.xpose.msrb.mxu3 %v2006_v62  ;;  %v4702_v27 = vperm.slane %v1694_v56, %v3890_v21 }
 0x2e3   :  { %v1733_v11 = vperm.slane %v1729_v15, %v3872_v57  ;;  %v1747_v63 = vrot.slane %v4351_v47, 4  ;;  %v5363_v34 = vrot.slane %v4329_v32, 4  ;;  %v886_v31 = vsel %vm453_vm13, %v885_v45, %v4667_v37 }
 0x2e4   :  { %v1719_v26 = vrot.slane %v4692_v55, 4  ;;  %v2024_v30 = vunpack.c.l.b16 %v901_v13  ;;  %v1691_v46 = vrot.slane %v1679_v4, 4  ;;  %v902_v51 = vpack.c.bf16 %v886_v31, %v886_v31 }
 0x2e5   :  { %v1760_v7 = vsel %vm453_vm13, %v4355_v6, %v5363_v34  ;;  %v1748_v36 = vsel %vm453_vm13, %v1733_v11, %v1747_v63  ;;  %v1703_v35 = vrot.slane %v4420_v29, 4  ;;  %v1745_v4 = vrot.slane %v1733_v11, 4 }
 0x2e6   :  { %v4713_v5 = vperm.slane %v1760_v7, %v3890_v21  ;;  %v1720_v42 = vsel %vm453_vm13, %v1719_v26, %v4702_v27  ;;  %v4720_v1 = vperm.slane %v1748_v36, %v3890_v21  ;;  %v1692_v19 = vsel %vm453_vm13, %v1691_v46, %v4389_v41 }
 0x2e7   :  { %v1889_v8 = vpack.c.bf16 %v1720_v42, %v1720_v42  ;;  %v2025_v50 = vunpack.c.l.b16 %v902_v51  ;;  %v1698_v28 = vperm.slane %v1692_v19, %v3890_v21  ;;  %v1704_v49 = vsel %vm453_vm13, %v1703_v35, %v4392_v22 }
 0x2e8   :  { %v1773_v17 = vrot.slane %v4713_v5, 4  ;;  %v1710_v52 = vperm.slane %v1704_v49, %v3890_v21  ;;  %v1757_v62 = vrot.slane %v4355_v6, 4  ;;  %v1746_v41 = vsel %vm453_vm13, %v1745_v4, %v4351_v47 }
 0x2e9   :  { %v2398_v29 = vunpack.c.l.b16 %v1889_v8  ;;  %v2026_v24 = vpack.c.b16 %v2025_v50, %v2024_v30  ;;  %v1717_v15 = vrot.slane %v1698_v28, 4  ;;  %v1752_v13 = vperm.slane %v1746_v41, %v3890_v21 }
 0x2ea   :  { %v1774_v20 = vsel %vm453_vm13, %v1773_v17, %v4720_v1  ;;  %v1715_v45 = vrot.slane %v1710_v52, 4  ;;  %v1758_v22 = vsel %vm453_vm13, %v1757_v62, %v4329_v32  ;;  %v5364_v56 = vrot.slane %v4442_v38, 4 }
 0x2eb   :  { %v1890_v40 = vpack.c.bf16 %v1774_v20, %v1774_v20  ;;  %3275 = vmatmul.msk.bf16.vlgmr.msra.gmra.mxu0 %vm1911_vm14, %v2026_v24  ;;  %v1764_v26 = vperm.slane %v1758_v22, %v3890_v21  ;;  %v1718_v63 = vsel %vm453_vm13, %v1710_v52, %v1717_v15  ;;  %v1771_v7 = vrot.slane %v1752_v13, 4 }
 0x2ec   :  { %v702_v11 = vsel %vm453_vm13, %v4445_v33, %v5364_v56  ;;  %v1716_v34 = vsel %vm453_vm13, %v1715_v45, %v1698_v28  ;;  %v1887_v31 = vpack.c.bf16 %v1718_v63, %v1718_v63  ;;  %v5365_v32 = vrot.slane %v4072_v60, 4 }
 0x2ed   :  { %v2399_v6 = vunpack.c.l.b16 %v1890_v40  ;;  %v710_v47 = vperm.slane %v702_v11, %v3890_v21  ;;  %v1769_v33 = vrot.slane %v1764_v26, 4  ;;  %v1885_v46 = vpack.c.bf16 %v1716_v34, %v1716_v34 }
 0x2ee   :  { %v714_v38 = vsel %vm453_vm13, %v4097_v12, %v5365_v32  ;;  %v1772_v42 = vsel %vm453_vm13, %v1764_v26, %v1771_v7  ;;  %v2370_v36 = vunpack.c.l.b16 %v1887_v31  ;;  %v5366_v35 = vrot.slane %v4469_v43, 4 }
 0x2ef   :  { %v2400_v30 = vpack.c.b16 %v2399_v6, %v2398_v29  ;;  %v722_v51 = vperm.slane %v714_v38, %v3890_v21  ;;  %v5367_v8 = vrot.slane %v4084_v58, 4  ;;  %v1770_v12 = vsel %vm453_vm13, %v1769_v33, %v1752_v13 }
 0x2f0   :  { %v756_v17 = vsel %vm453_vm13, %v4461_v59, %v5366_v35  ;;  %v2342_v19 = vunpack.c.l.b16 %v1885_v46  ;;  %v1888_v50 = vpack.c.bf16 %v1772_v42, %v1772_v42  ;;  %v1886_v49 = vpack.c.bf16 %v1770_v12, %v1770_v12 }
 0x2f1   :  { %v768_v60 = vsel %vm453_vm13, %v4105_v16, %v5367_v8  ;;  %2412 = vmatpush.bf16.msra.mxu2 %v2400_v30  ;;  %v727_v28 = vrot.slane %v722_v51, 4  ;;  %v764_v4 = vperm.slane %v756_v17, %v3890_v21  ;;  %v834_v59 = vsel %vm453_vm13, %v4664_v25, %v833_v14 }
 0x2f2   :  { %v776_v20 = vperm.slane %v768_v60, %v3890_v21  ;;  %v2371_v58 = vunpack.c.l.b16 %v1888_v50  ;;  %v888_v16 = vsel %vm453_vm13, %v4679_v2, %v887_v0  ;;  %v903_v29 = vpack.c.bf16 %v834_v59, %v834_v59 }
 0x2f3   :  { %v728_v43 = vsel %vm453_vm13, %v727_v28, %v710_v47  ;;  %v2343_v52 = vunpack.c.l.b16 %v1886_v49  ;;  %v904_v40 = vpack.c.bf16 %v888_v16, %v888_v16  ;;  %v1334_v9 = vsel %vm453_vm13, %v4564_v54, %v1333_v23 }
 0x2f4   :  { %v781_v62 = vrot.slane %v776_v20, 4  ;;  %v897_v24 = vpack.c.bf16 %v728_v43, %v728_v43  ;;  %v2372_v41 = vpack.c.b16 %v2371_v58, %v2370_v36  ;;  %v1388_v25 = vsel %vm453_vm13, %v4576_v44, %v1387_v10 }
 0x2f5   :  { %v2344_v37 = vpack.c.b16 %v2343_v52, %v2342_v19  ;;  %v2054_v0 = vunpack.c.l.b16 %v903_v29  ;;  %v2055_v45 = vunpack.c.l.b16 %v904_v40  ;;  %v1403_v13 = vpack.c.bf16 %v1334_v9, %v1334_v9 }
 0x2f6   :  { %v782_v14 = vsel %vm453_vm13, %v781_v62, %v764_v4  ;;  %v1964_v2 = vunpack.c.l.b16 %v897_v24  ;;  %2384 = vmatpush.bf16.msra.mxu1 %v2372_v41  ;;  %v1404_v22 = vpack.c.bf16 %v1388_v25, %v1388_v25  ;;  %v729_v6 = vrot.slane %v710_v47, 4 }
 0x2f7   :  { %v898_v15 = vpack.c.bf16 %v782_v14, %v782_v14  ;;  %2356 = vmatpush.bf16.msra.mxu0 %v2344_v37  ;;  %v2119_v56 = vunpack.c.l.b16 %v1403_v13  ;;  %v2056_v23 = vpack.c.b16 %v2055_v45, %v2054_v0  ;;  %v783_v26 = vrot.slane %v764_v4, 4 }
 0x2f8   :  { %v2120_v11 = vunpack.c.l.b16 %v1404_v22  ;;  %v1721_v10 = vrot.slane %v4702_v27, 4  ;;  %v1775_v63 = vrot.slane %v4720_v1, 4  ;;  %v730_v34 = vsel %vm453_vm13, %v722_v51, %v729_v6 }
 0x2f9   :  { %v1965_v3 = vunpack.c.l.b16 %v898_v15  ;;  %v784_v7 = vsel %vm453_vm13, %v776_v20, %v783_v26  ;;  %v899_v32 = vpack.c.bf16 %v730_v34, %v730_v34  ;;  %v837_v35 = vrot.slane %v4610_v39, 4 }
 0x2fa   :  { %v2121_v18 = vpack.c.b16 %v2120_v11, %v2119_v56  ;;  %v1722_v31 = vsel %vm453_vm13, %v4692_v55, %v1721_v10  ;;  %v1776_v47 = vsel %vm453_vm13, %v4713_v5, %v1775_v63  ;;  %v900_v38 = vpack.c.bf16 %v784_v7, %v784_v7 }
 0x2fb   :  { %v1966_v54 = vpack.c.b16 %v1965_v3, %v1964_v2  ;;  %3276 = vmatmul.msk.bf16.vlgmr.msrb.gmra.mxu0 %vm1911_vm14, %v2056_v23  ;;  %v1891_v30 = vpack.c.bf16 %v1722_v31, %v1722_v31  ;;  %v1892_v33 = vpack.c.bf16 %v1776_v47, %v1776_v47  ;;  %v1994_v46 = vunpack.c.l.b16 %v899_v32  ;;  %v5368_v23 = vld [vmem:[#allocation17_spill] sm:$0xff] }
 0x2fc   :  { %v2126_v44 = vsel %vm1911_vm14, %v2121_v18, 0  ;;  %v1995_v42 = vunpack.c.l.b16 %v900_v38  ;;  %v891_v51 = vrot.slane %v4636_v48, 4  ;;  %v838_v55 = vsel %vm453_vm13, %v4620_v53, %v837_v35  ;;  %v4854_v18 = vpop.permute.xlu1 %3443 }
 0x2fd   :  { %3273 = vmatmul.msk.bf16.vlgmr.msra.gmra.mxu3 %vm1911_vm14, %v1966_v54  ;;  %v2426_v27 = vunpack.c.l.b16 %v1891_v30  ;;  %v2427_v36 = vunpack.c.l.b16 %v1892_v33  ;;  %v907_v8 = vpack.c.bf16 %v838_v55, %v838_v55 }
 0x2fe   :  { %2135 = vmatpush.bf16.xpose.msra.mxu3 %v2126_v44  ;;  %v1996_v1 = vpack.c.b16 %v1995_v42, %v1994_v46  ;;  %v892_v5 = vsel %vm453_vm13, %v4639_v61, %v891_v51 }
 0x2ff   :  { %v2428_v17 = vpack.c.b16 %v2427_v36, %v2426_v27  ;;  %v908_v60 = vpack.c.bf16 %v892_v5, %v892_v5  ;;  %v2114_v12 = vunpack.c.l.b16 %v907_v8 }
 0x301   :  { %v2115_v19 = vunpack.c.l.b16 %v908_v60 }
 0x303   :  { %v2116_v50 = vpack.c.b16 %v2115_v19, %v2114_v12 }
 0x30d   :  { %3274 = vmatmul.msk.bf16.vlgmr.msrb.gmra.mxu3 %vm1911_vm14, %v1996_v1 }
 0x30e   :  { %2440 = vmatpush.bf16.msrb.mxu3 %v2428_v17 }
 0x31d   :  { %3278 = vmatmul.msk.bf16.vlgmr.msra.gmra.mxu3 %vm1911_vm14, %v2116_v50 }
 0x342   :  { %v4800_v39 = vpop.f32.mrf.mxu3 }
 0x343   :  { %v2143_v48 = vsel %vm2142_vm15, %v4800_v39, -inf }
 0x344   :  { %2144 = vmax.xlane.f32.xlu0 %v2143_v48 }
 0x34a   :  { %v4804_v28 = vpop.f32.mrf.mxu3 }
 0x34b   :  { %v2146_v53 = vsel %vm2142_vm15, %v4804_v28, -inf }
 0x34c   :  { %2147 = vmax.xlane.f32.xlu2 %v2146_v53 }
 0x35f   :  { %v4816_v59 = vpop.f32.mrf.mxu3 }
 0x360   :  { %v2149_v43 = vsel %vm2142_vm15, %v4816_v59, -inf }
 0x364   :  { %v4808_v61 = vpop.f32.mrf.mxu2 }
 0x365   :  { %v2179_v49 = vsel %vm2142_vm15, %v4808_v61, -inf }
 0x366   :  { %2180 = vmax.xlane.f32.xlu2 %v2179_v49 }
 0x367   :  { %v1959_v29 = vpop.f32.mrf.mxu3 }
 0x368   :  { %v4812_v4 = vpop.f32.mrf.mxu0  ;;  %v2152_v40 = vsel %vm2142_vm15, %v1959_v29, -inf }
 0x369   :  { %v2167_v20 = vsel %vm2142_vm15, %v4812_v4, -inf }
 0x36a   :  { %2168 = vmax.xlane.f32.xlu1 %v2167_v20 }
 0x36c   :  { %v4824_v52 = vpop.f32.mrf.mxu2 }
 0x36d   :  { %v2182_v24 = vsel %vm2142_vm15, %v4824_v52, -inf }
 0x370   :  { %v4818_v58 = vpop.f32.mrf.mxu0 }
 0x371   :  { %v2170_v16 = vsel %vm2142_vm15, %v4818_v58, -inf }
 0x372   :  { %2150 = vmax.xlane.f32.xlu1 %v2149_v43  ;;  %2171 = vmax.xlane.f32.xlu0 %v2170_v16 }
 0x378   :  { %v4826_v62 = vpop.f32.mrf.mxu0 }
 0x379   :  { %v2173_v41 = vsel %vm2142_vm15, %v4826_v62, -inf }
 0x37a   :  { %2183 = vmax.xlane.f32.xlu1 %v2182_v24  ;;  %2153 = vmax.xlane.f32.xlu0 %v2152_v40 }
 0x37b   :  { %2174 = vmax.xlane.f32.xlu2 %v2173_v41 }
 0x380   :  { %v1987_v9 = vpop.f32.mrf.mxu3  ;;  %v4834_v37 = vpop.f32.mrf.mxu0 }
 0x381   :  { %v2155_v25 = vsel %vm2142_vm15, %v1987_v9, -inf  ;;  %v2176_v0 = vsel %vm2142_vm15, %v4834_v37, -inf }
 0x382   :  { %2156 = vmax.xlane.f32.xlu1 %v2155_v25 }
 0x388   :  { %v1989_v14 = vpop.f32.mrf.mxu3 }
 0x389   :  { %v2158_v2 = vsel %vm2142_vm15, %v1989_v14, -inf }
 0x38a   :  { %2159 = vmax.xlane.f32.xlu0 %v2158_v2  ;;  %2177 = vmax.xlane.f32.xlu1 %v2176_v0 }
 0x390   :  { %v2017_v15 = vpop.f32.mrf.mxu3 }
 0x391   :  { %v2161_v45 = vsel %vm2142_vm15, %v2017_v15, -inf }
 0x392   :  { %2162 = vmax.xlane.f32.xlu2 %v2161_v45 }
 0x398   :  { %v4840_v13 = vpop.f32.mrf.mxu3 }
 0x399   :  { %v2164_v22 = vsel %vm2142_vm15, %v4840_v13, -inf }
 0x39a   :  { %2165 = vmax.xlane.f32.xlu1 %v2164_v22 }
 0x3a0   :  { %v4844_v3 = vpop.f32.mrf.mxu3 }
 0x3a1   :  { %v2185_v56 = vsel %vm2142_vm15, %v4844_v3, -inf }
 0x3a2   :  { %2186 = vmax.xlane.f32.xlu0 %v2185_v56 }
 0x3a8   :  { %v4848_v11 = vpop.f32.mrf.mxu3 }
 0x3a9   :  { %v2188_v54 = vsel %vm2142_vm15, %v4848_v11, -inf }
 0x3aa   :  { %2189 = vmax.xlane.f32.xlu2 %v2188_v54 }
 0x3b3   :  { %3448 = vrot.lane.b32.xlu1 %v5368_v23, %s3700_s19 }
 0x3b7   :  { %v2145_v6 = vpop.xlane.xlu0 %2144 }
 0x3b8   :  { %v2191_v33 = vsub.f32 %v4800_v39, %v2145_v6 }
 0x3ba   :  { %v2207_v36 = vmul.f32 1.442695, %v2191_v33 }
 0x3bf   :  { %v2148_v63 = vpop.xlane.xlu2 %2147 }
 0x3c0   :  { %v2192_v55 = vsub.f32 %v4804_v28, %v2148_v63 }
 0x3c2   :  { %v2209_v60 = vmul.f32 1.442695, %v2192_v55 }
 0x3d9   :  { %v4858_v32 = vpop.xlane.xlu2 %2180 }
 0x3dd   :  { %v2169_v26 = vpop.xlane.xlu1 %2168 }
 0x3de   :  { %v2199_v48 = vsub.f32 %v4812_v4, %v2169_v26 }
 0x3e0   :  { %v2223_v43 = vmul.f32 1.442695, %v2199_v48 }
 0x3e5   :  { %v2151_v44 = vpop.xlane.xlu1 %2150  ;;  %v4856_v10 = vpop.xlane.xlu0 %2171 }
 0x3e6   :  { %v2193_v49 = vsub.f32 %v4816_v59, %v2151_v44  ;;  %v2200_v63 = vsub.f32 %v4818_v58, %v4856_v10 }
 0x3e8   :  { %v2211_v16 = vmul.f32 1.442695, %v2193_v49  ;;  %v5370_v49 = vld [vmem:[#allocation16_spill] sm:$0xff] }
 0x3ed   :  { %v2184_v34 = vpop.xlane.xlu1 %2183  ;;  %v2154_v7 = vpop.xlane.xlu0 %2153 }
 0x3ee   :  { %v2194_v31 = vsub.f32 %v1959_v29, %v2154_v7  ;;  %v2175_v1 = vpop.xlane.xlu2 %2174  ;;  %v2204_v4 = vsub.f32 %v4824_v52, %v2184_v34  ;;  %v2225_v7 = vmul.f32 1.442695, %v2200_v63 }
 0x3ef   :  { %v2201_v52 = vsub.f32 %v4826_v62, %v2175_v1 }
 0x3f0   :  { %v2213_v47 = vmul.f32 1.442695, %v2194_v31 }
 0x3f1   :  { %v2227_v6 = vmul.f32 1.442695, %v2201_v52 }
 0x3f2   :  { %3500 = vpow2.f32 %v2213_v47 }
 0x3f5   :  { %v2157_v38 = vpop.xlane.xlu1 %2156 }
 0x3f6   :  { %v2195_v30 = vsub.f32 %v1987_v9, %v2157_v38  ;;  %v2233_v9 = vmul.f32 1.442695, %v2204_v4 }
 0x3f8   :  { %v2215_v46 = vmul.f32 1.442695, %v2195_v30  ;;  %v4861_v42 = vpop.eup %3500 }
 0x3f9   :  { %v2248_v27 = vsel %vm2142_vm15, %v4861_v42, 0.0 }
 0x3fa   :  { %3502 = vpow2.f32 %v2215_v46  ;;  %2249 = vadd.xlane.f32.xlu1 %v2248_v27 }
 0x3fb   :  { %3504 = vpow2.f32 %v2207_v36 }
 0x3fd   :  { %v2160_v35 = vpop.xlane.xlu0 %2159  ;;  %v2178_v24 = vpop.xlane.xlu1 %2177 }
 0x3fe   :  { %v2196_v51 = vsub.f32 %v1989_v14, %v2160_v35  ;;  %v2202_v33 = vsub.f32 %v4834_v37, %v2178_v24 }
 0x400   :  { %v2217_v17 = vmul.f32 1.442695, %v2196_v51  ;;  %v4866_v5 = vpop.eup %3502  ;;  %v2229_v27 = vmul.f32 1.442695, %v2202_v33 }
 0x401   :  { %v2251_v8 = vsel %vm2142_vm15, %v4866_v5, 0.0  ;;  %v4870_v50 = vpop.eup %3504 }
 0x402   :  { %3506 = vpow2.f32 %v2217_v17  ;;  %2252 = vadd.xlane.f32.xlu0 %v2251_v8  ;;  %v2239_v20 = vsel %vm2142_vm15, %v4870_v50, 0.0 }
 0x403   :  { %3508 = vpow2.f32 %v2209_v60 }
 0x405   :  { %v2163_v12 = vpop.xlane.xlu2 %2162 }
 0x406   :  { %v2197_v19 = vsub.f32 %v2017_v15, %v2163_v12 }
 0x408   :  { %v4872_v39 = vpop.eup %3506  ;;  %v2219_v53 = vmul.f32 1.442695, %v2197_v19 }
 0x409   :  { %v2254_v28 = vsel %vm2142_vm15, %v4872_v39, 0.0  ;;  %v4880_v29 = vpop.eup %3508 }
 0x40a   :  { %3510 = vpow2.f32 %v2219_v53  ;;  %2255 = vadd.xlane.f32.xlu2 %v2254_v28  ;;  %2240 = vadd.xlane.f32.xlu0 %v2239_v20  ;;  %v2242_v59 = vsel %vm2142_vm15, %v4880_v29, 0.0  ;;  %v5369_v53 = vld [vmem:[#allocation15_spill] sm:$0xff]  ;;  %v1615_v20 = vrot.slane %v5370_v49, 4 }
 0x40b   :  { %3512 = vpow2.f32 %v2223_v43  ;;  %v1559_v28 = vrot.slane %v5369_v53, 4 }
 0x40c   :  { %3514 = vpow2.f32 %v2211_v16 }
 0x40d   :  { %v2166_v0 = vpop.xlane.xlu1 %2165  ;;  %3516 = vpow2.f32 %v2233_v9 }
 0x40e   :  { %v2198_v56 = vsub.f32 %v4840_v13, %v2166_v0 }
 0x410   :  { %v4882_v40 = vpop.eup %3510 }
 0x411   :  { %v2257_v41 = vsel %vm2142_vm15, %v4882_v40, 0.0  ;;  %v4889_v14 = vpop.eup %3512 }
 0x412   :  { %2258 = vadd.xlane.f32.xlu1 %v2257_v41  ;;  %2243 = vadd.xlane.f32.xlu0 %v2242_v59  ;;  %v4892_v15 = vpop.eup %3514  ;;  %v2263_v22 = vsel %vm2142_vm15, %v4889_v14, 0.0  ;;  %v3446_v59 = vunpack.i.h.bf16 %v4854_v18 }
 0x413   :  { %v2245_v54 = vsel %vm2142_vm15, %v4892_v15, 0.0  ;;  %v4900_v26 = vpop.eup %3516 }
 0x414   :  { %v2278_v13 = vsel %vm2142_vm15, %v4900_v26, 0.0 }
 0x415   :  { %v2187_v25 = vpop.xlane.xlu0 %2186 }
 0x416   :  { %v2205_v2 = vsub.f32 %v4844_v3, %v2187_v25  ;;  %v2221_v3 = vmul.f32 1.442695, %v2198_v56  ;;  %v3445_v25 = vunpack.i.l.bf16 %v4854_v18  ;;  %v1627_v56 = vrot.slane %v3446_v59, 4 }
 0x418   :  { %v2235_v45 = vmul.f32 1.442695, %v2205_v2 }
 0x41a   :  { %3518 = vpow2.f32 %v2235_v45  ;;  %2264 = vadd.xlane.f32.xlu1 %v2263_v22  ;;  %2246 = vadd.xlane.f32.xlu0 %v2245_v54 }
 0x41b   :  { %3520 = vpow2.f32 %v2227_v6 }
 0x41c   :  { %3522 = vpow2.f32 %v2221_v3 }
 0x41d   :  { %v2190_v31 = vpop.xlane.xlu2 %2189  ;;  %3524 = vpow2.f32 %v2225_v7 }
 0x41e   :  { %v2206_v58 = vsub.f32 %v4848_v11, %v2190_v31  ;;  %v2203_v11 = vsub.f32 %v4808_v61, %v4858_v32 }
 0x420   :  { %v4902_v44 = vpop.eup %3518  ;;  %v2237_v10 = vmul.f32 1.442695, %v2206_v58  ;;  %v2231_v35 = vmul.f32 1.442695, %v2203_v11 }
 0x421   :  { %v2281_v62 = vsel %vm2142_vm15, %v4902_v44, 0.0  ;;  %v4912_v34 = vpop.eup %3520 }
 0x422   :  { %3453 = vrot.lane.b32.xlu2 %v5368_v23, %s3703_s2  ;;  %2282 = vadd.xlane.f32.xlu1 %v2281_v62  ;;  %v4914_v47 = vpop.eup %3522  ;;  %v2269_v38 = vsel %vm2142_vm15, %v4912_v34, 0.0  ;;  %3526 = vpow2.f32 %v2237_v10  ;;  %v1571_v62 = vrot.slane %v3445_v25, 4 }
 0x423   :  { %2279 = vadd.xlane.f32.xlu0 %v2278_v13  ;;  %v2260_v23 = vsel %vm2142_vm15, %v4914_v47, 0.0  ;;  %v4921_v30 = vpop.eup %3524  ;;  %3528 = vpow2.f32 %v2229_v27 }
 0x424   :  { %v2266_v46 = vsel %vm2142_vm15, %v4921_v30, 0.0  ;;  %3530 = vpow2.f32 %v2231_v35 }
 0x425   :  { %v3449_v61 = vpop.permute.xlu1 %3448 }
 0x426   :  { %v3451_v8 = vunpack.i.h.bf16 %v3449_v61  ;;  %v3450_v60 = vunpack.i.l.bf16 %v3449_v61 }
 0x428   :  { %v4926_v36 = vpop.eup %3526  ;;  %v1613_v12 = vrot.slane %v3451_v8, 4  ;;  %v1557_v43 = vrot.slane %v3450_v60, 4  ;;  %v1616_v4 = vsel %vm453_vm13, %v3451_v8, %v1615_v20  ;;  %v1560_v41 = vsel %vm453_vm13, %v3450_v60, %v1559_v28 }
 0x429   :  { %v2284_v1 = vsel %vm2142_vm15, %v4926_v36, 0.0  ;;  %v4932_v51 = vpop.eup %3528  ;;  %v1624_v0 = vperm.slane %v1616_v4, %v3872_v57  ;;  %v1568_v45 = vperm.slane %v1560_v41, %v3872_v57 }
 0x42a   :  { %2270 = vadd.xlane.f32.xlu1 %v2269_v38  ;;  %v2272_v37 = vsel %vm2142_vm15, %v4932_v51, 0.0  ;;  %v4936_v17 = vpop.eup %3530  ;;  %v1614_v24 = vsel %vm453_vm13, %v1613_v12, %v5370_v49  ;;  %v1558_v52 = vsel %vm453_vm13, %v1557_v43, %v5369_v53 }
 0x42b   :  { %2261 = vadd.xlane.f32.xlu0 %v2260_v23  ;;  %v2275_v55 = vsel %vm2142_vm15, %v4936_v17, 0.0  ;;  %v1620_v2 = vperm.slane %v1614_v24, %v3872_v57  ;;  %v1651_v31 = vrot.slane %v1624_v0, 4  ;;  %v1595_v38 = vrot.slane %v1568_v45, 4 }
 0x42d   :  { %v1639_v7 = vrot.slane %v1620_v2, 4 }
 0x433   :  { %2267 = vadd.xlane.f32.xlu0 %v2266_v46 }
 0x43b   :  { %2285 = vadd.xlane.f32.xlu0 %v2284_v1 }
 0x443   :  { %2273 = vadd.xlane.f32.xlu0 %v2272_v37 }
 0x44b   :  { %2276 = vadd.xlane.f32.xlu2 %v2275_v55 }
 0x46d   :  { %v2250_v10 = vpop.xlane.xlu1 %2249 }
 0x475   :  { %v2253_v32 = vpop.xlane.xlu0 %2252 }
 0x476   :  { %3532 = vrcp.f32 %v2253_v32 }
 0x47c   :  { %v3533_v48 = vpop.eup %3532 }
 0x47d   :  { %v2256_v19 = vpop.xlane.xlu2 %2255  ;;  %v2241_v16 = vpop.xlane.xlu0 %2240  ;;  %v2307_v9 = vmul.f32 %v3533_v48, %v4866_v5  ;;  %v1564_v5 = vperm.slane %v1558_v52, %v3872_v57 }
 0x47e   :  { %3534 = vrcp.f32 %v2256_v19 }
 0x47f   :  { %3536 = vrcp.f32 %v2241_v16  ;;  %v2323_v54 = vpack.c.bf16 %v2307_v9, %v2307_v9  ;;  %v1583_v55 = vrot.slane %v1564_v5, 4 }
 0x484   :  { %v3535_v22 = vpop.eup %3534 }
 0x485   :  { %v2308_v6 = vmul.f32 %v3535_v22, %v4872_v39  ;;  %v3454_v3 = vpop.permute.xlu2 %3453  ;;  %v3537_v13 = vpop.eup %3536  ;;  %v2393_v39 = vunpack.c.l.b16 %v2323_v54 }
 0x486   :  { %v3456_v63 = vunpack.i.h.bf16 %v3454_v3  ;;  %v3455_v18 = vunpack.i.l.bf16 %v3454_v3  ;;  %v2244_v23 = vpop.xlane.xlu0 %2243  ;;  %v4961_v61 = vmul.f32 %v3537_v13, %v4870_v50 }
 0x487   :  { %v2324_v58 = vpack.c.bf16 %v2308_v6, %v2308_v6  ;;  %3538 = vrcp.f32 %v2244_v23 }
 0x488   :  { %v1625_v33 = vrot.slane %v3456_v63, 4  ;;  %v1628_v46 = vsel %vm453_vm13, %v3456_v63, %v1627_v56  ;;  %v1569_v27 = vrot.slane %v3455_v18, 4  ;;  %v1572_v11 = vsel %vm453_vm13, %v3455_v18, %v1571_v62  ;;  %v2259_v62 = vpop.xlane.xlu1 %2258 }
 0x489   :  { %v2394_v1 = vunpack.c.l.b16 %v2324_v58  ;;  %v1636_v35 = vperm.slane %v1628_v46, %v3872_v57  ;;  %v1580_v37 = vperm.slane %v1572_v11, %v3872_v57  ;;  %3540 = vrcp.f32 %v2250_v10 }
 0x48a   :  { %v1626_v32 = vsel %vm453_vm13, %v1625_v33, %v3446_v59  ;;  %v1570_v8 = vsel %vm453_vm13, %v1569_v27, %v3445_v25  ;;  %3542 = vrcp.f32 %v2259_v62 }
 0x48b   :  { %v2395_v60 = vpack.c.b16 %v2394_v1, %v2393_v39  ;;  %v1632_v12 = vperm.slane %v1626_v32, %v3872_v57  ;;  %v1649_v19 = vrot.slane %v1636_v35, 4  ;;  %v1576_v48 = vperm.slane %v1570_v8, %v3872_v57 }
 0x48c   :  { %v1593_v53 = vrot.slane %v1580_v37, 4  ;;  %v1596_v28 = vsel %vm453_vm13, %v1580_v37, %v1595_v38  ;;  %v1652_v49 = vsel %vm453_vm13, %v1636_v35, %v1651_v31 }
 0x48d   :  { %v1637_v20 = vrot.slane %v1632_v12, 4  ;;  %v1604_v50 = vperm.slane %v1596_v28, %v3890_v21  ;;  %v1640_v43 = vsel %vm453_vm13, %v1632_v12, %v1639_v7  ;;  %v1650_v16 = vsel %vm453_vm13, %v1649_v19, %v1624_v0  ;;  %3281 = vmatmul.msk.bf16.vlgmr.msra.gmra.mxu2 %vm2142_vm15, %v2395_v60 }
 0x48e   :  { %v1581_v24 = vrot.slane %v1576_v48, 4  ;;  %v1584_v4 = vsel %vm453_vm13, %v1576_v48, %v1583_v55  ;;  %v1594_v41 = vsel %vm453_vm13, %v1593_v53, %v1568_v45  ;;  %v1648_v59 = vperm.slane %v1640_v43, %v3890_v21  ;;  %v2247_v56 = vpop.xlane.xlu0 %2246  ;;  %v3539_v45 = vpop.eup %3538 }
 0x48f   :  { %v1592_v9 = vperm.slane %v1584_v4, %v3890_v21  ;;  %v1600_v25 = vperm.slane %v1594_v41, %v3890_v21  ;;  %v1611_v52 = vrot.slane %v1604_v50, 4  ;;  %v1638_v22 = vsel %vm453_vm13, %v1637_v20, %v1620_v2  ;;  %v3541_v8 = vpop.eup %3540 }
 0x490   :  { %v1582_v54 = vsel %vm453_vm13, %v1581_v24, %v1564_v5  ;;  %v1644_v0 = vperm.slane %v1638_v22, %v3890_v21  ;;  %v1656_v6 = vperm.slane %v1650_v16, %v3890_v21  ;;  %v1660_v3 = vperm.slane %v1652_v49, %v3890_v21  ;;  %v3543_v43 = vpop.eup %3542  ;;  %v2265_v22 = vpop.xlane.xlu1 %2264 }
 0x491   :  { %v1588_v63 = vperm.slane %v1582_v54, %v3890_v21  ;;  %v1607_v18 = vrot.slane %v1592_v9, 4  ;;  %v1609_v13 = vrot.slane %v1600_v25, 4  ;;  %v1663_v31 = vrot.slane %v1648_v59, 4 }
 0x492   :  { %v1661_v7 = vrot.slane %v1644_v0, 4  ;;  %v1665_v38 = vrot.slane %v1656_v6, 4  ;;  %v1667_v2 = vrot.slane %v1660_v3, 4  ;;  %v2319_v5 = vpack.c.bf16 %v4961_v61, %v4961_v61 }
 0x493   :  { %v1605_v58 = vrot.slane %v1588_v63, 4  ;;  %v1612_v23 = vsel %vm453_vm13, 0.0, %v1611_v52  ;;  %v1608_v33 = vsel %vm453_vm13, 0.0, %v1607_v18  ;;  %v1610_v46 = vsel %vm453_vm13, 0.0, %v1609_v13 }
 0x494   :  { %v1668_v10 = vsel %vm453_vm13, 0.0, %v1667_v2  ;;  %v1777_v27 = vsel %vm453_vm13, %v1607_v18, %v1588_v63  ;;  %v1662_v11 = vsel %vm453_vm13, 0.0, %v1661_v7  ;;  %v1664_v39 = vsel %vm453_vm13, 0.0, %v1663_v31 }
 0x495   :  { %v1666_v1 = vsel %vm453_vm13, 0.0, %v1665_v38  ;;  %v1788_v35 = vsel %vm453_vm13, %v1611_v52, %v1600_v25  ;;  %v1606_v37 = vsel %vm453_vm13, 0.0, %v1605_v58  ;;  %v1793_v61 = vrot.slane %v1612_v23, 4 }
 0x496   :  { %v4997_v55 = vperm.slane %v1788_v35, %v3872_v57  ;;  %v1831_v32 = vsel %vm453_vm13, %v1663_v31, %v1644_v0  ;;  %v1781_v60 = vperm.slane %v1777_v27, %v3872_v57  ;;  %v1782_v12 = vrot.slane %v1608_v33, 4  ;;  %v5002_v53 = vpop.xlane.xlu0 %2279 }
 0x497   :  { %v1842_v19 = vsel %vm453_vm13, %v1667_v2, %v1656_v6  ;;  %v1847_v48 = vrot.slane %v1668_v10, 4  ;;  %v1794_v28 = vsel %vm453_vm13, %v1793_v61, %v1610_v46  ;;  %v2304_v50 = vmul.f32 %v3539_v45, %v4880_v29 }
 0x498   :  { %v1813_v49 = vrot.slane %v4997_v55, 4  ;;  %v5007_v20 = vperm.slane %v1842_v19, %v3872_v57  ;;  %v1798_v16 = vperm.slane %v1794_v28, %v3872_v57  ;;  %v1835_v24 = vperm.slane %v1831_v32, %v3872_v57 }
 0x499   :  { %v1836_v4 = vrot.slane %v1664_v39, 4  ;;  %v1848_v41 = vsel %vm453_vm13, %v1847_v48, %v1666_v1  ;;  %v2320_v25 = vpack.c.bf16 %v2304_v50, %v2304_v50  ;;  %3544 = vrcp.f32 %v2247_v56 }
 0x49a   :  { %v5014_v59 = vperm.slane %v1848_v41, %v3872_v57  ;;  %v1867_v9 = vrot.slane %v5007_v20, 4  ;;  %v2306_v52 = vmul.f32 %v3541_v8, %v4861_v42  ;;  %v1783_v29 = vsel %vm453_vm13, %v1782_v12, %v1606_v37 }
 0x49b   :  { %v1801_v54 = vrot.slane %v1781_v60, 4  ;;  %v2337_v0 = vunpack.c.l.b16 %v2319_v5  ;;  %v2338_v6 = vunpack.c.l.b16 %v2320_v25  ;;  %v1787_v3 = vperm.slane %v1783_v29, %v3872_v57 }
 0x49c   :  { %v1814_v62 = vsel %vm453_vm13, %v1798_v16, %v1813_v49  ;;  %v1837_v63 = vsel %vm453_vm13, %v1836_v4, %v1662_v11  ;;  %v1855_v18 = vrot.slane %v1835_v24, 4  ;;  %v1868_v56 = vsel %vm453_vm13, %v5014_v59, %v1867_v9  ;;  %v2283_v49 = vpop.xlane.xlu1 %2282 }
 0x49d   :  { %v1822_v45 = vperm.slane %v1814_v62, %v3890_v21  ;;  %v2309_v42 = vmul.f32 %v3543_v43, %v4882_v40  ;;  %v2339_v13 = vpack.c.b16 %v2338_v6, %v2337_v0  ;;  %v1802_v7 = vsel %vm453_vm13, %v1787_v3, %v1801_v54 }
 0x49e   :  { %v1841_v31 = vperm.slane %v1837_v63, %v3872_v57  ;;  %v2262_v38 = vpop.xlane.xlu0 %2261  ;;  %v1810_v2 = vperm.slane %v1802_v7, %v3890_v21  ;;  %v1876_v58 = vperm.slane %v1868_v56, %v3890_v21  ;;  %v1799_v23 = vrot.slane %v1787_v3, 4 }
 0x49f   :  { %v1827_v5 = vrot.slane %v1822_v45, 4  ;;  %v3545_v33 = vpop.eup %3544  ;;  %v2322_v46 = vpack.c.bf16 %v2306_v52, %v2306_v52  ;;  %3279 = vmatmul.msk.bf16.vlgmr.msra.gmra.mxu0 %vm2142_vm15, %v2339_v13  ;;  %3546 = vrcp.f32 %v2262_v38  ;;  %v1811_v40 = vrot.slane %v1798_v16, 4 }
 0x4a0   :  { %v1856_v10 = vsel %vm453_vm13, %v1841_v31, %v1855_v18  ;;  %v2305_v27 = vmul.f32 %v3545_v33, %v4892_v15  ;;  %v1881_v1 = vrot.slane %v1876_v58, 4  ;;  %v2325_v37 = vpack.c.bf16 %v2309_v42, %v2309_v42 }
 0x4a1   :  { %v1828_v11 = vsel %vm453_vm13, %v1827_v5, %v1810_v2  ;;  %v1864_v39 = vperm.slane %v1856_v10, %v3890_v21  ;;  %v1800_v8 = vsel %vm453_vm13, %v1799_v23, %v1781_v60  ;;  %v2366_v48 = vunpack.c.l.b16 %v2322_v46 }
 0x4a2   :  { %v1897_v35 = vpack.c.bf16 %v1828_v11, %v1828_v11  ;;  %v2321_v61 = vpack.c.bf16 %v2305_v27, %v2305_v27  ;;  %v1812_v15 = vsel %vm453_vm13, %v1811_v40, %v4997_v55  ;;  %v1806_v16 = vperm.slane %v1800_v8, %v3890_v21 }
 0x4a3   :  { %v1882_v32 = vsel %vm453_vm13, %v1881_v1, %v1864_v39  ;;  %v1818_v4 = vperm.slane %v1812_v15, %v3890_v21  ;;  %v1853_v41 = vrot.slane %v1841_v31, 4  ;;  %v2421_v9 = vunpack.c.l.b16 %v2325_v37 }
 0x4a4   :  { %v1898_v12 = vpack.c.bf16 %v1882_v32, %v1882_v32  ;;  %v2510_v19 = vunpack.c.l.b16 %v1897_v35  ;;  %v2365_v28 = vunpack.c.l.b16 %v2321_v61  ;;  %3548 = vrcp.f32 %v2265_v22  ;;  %v2271_v27 = vpop.xlane.xlu1 %2270 }
 0x4a5   :  { %v3547_v50 = vpop.eup %3546  ;;  %v1823_v54 = vrot.slane %v1818_v4, 4  ;;  %v1854_v0 = vsel %vm453_vm13, %v1853_v41, %v1835_v24  ;;  %v1865_v6 = vrot.slane %v5014_v59, 4  ;;  %3550 = vrcp.f32 %v2283_v49 }
 0x4a6   :  { %v2511_v43 = vunpack.c.l.b16 %v1898_v12  ;;  %v2367_v25 = vpack.c.b16 %v2366_v48, %v2365_v28  ;;  %v2310_v60 = vmul.f32 %v3547_v50, %v4914_v47  ;;  %v2268_v52 = vpop.xlane.xlu0 %2267  ;;  %v1860_v3 = vperm.slane %v1854_v0, %v3890_v21 }
 0x4a7   :  { %v1829_v62 = vrot.slane %v1810_v2, 4  ;;  %v1824_v22 = vsel %vm453_vm13, %v1823_v54, %v1806_v16  ;;  %v1866_v47 = vsel %vm453_vm13, %v1865_v6, %v5007_v20  ;;  %v1883_v63 = vrot.slane %v1864_v39, 4 }
 0x4a8   :  { %v2512_v29 = vpack.c.b16 %v2511_v43, %v2510_v19  ;;  %v2326_v55 = vpack.c.bf16 %v2310_v60, %v2310_v60  ;;  %3280 = vmatmul.msk.bf16.vlgmr.msra.gmra.mxu1 %vm2142_vm15, %v2367_v25  ;;  %v1825_v18 = vrot.slane %v1806_v16, 4  ;;  %v1872_v24 = vperm.slane %v1866_v47, %v3890_v21 }
 0x4a9   :  { %v1893_v42 = vpack.c.bf16 %v1824_v22, %v1824_v22  ;;  %v1830_v59 = vsel %vm453_vm13, %v1822_v45, %v1829_v62  ;;  %v1884_v13 = vsel %vm453_vm13, %v1876_v58, %v1883_v63  ;;  %v1879_v38 = vrot.slane %v1860_v3, 4 }
 0x4aa   :  { %2524 = vmatpush.bf16.msrb.mxu2 %v2512_v29  ;;  %v2422_v56 = vunpack.c.l.b16 %v2326_v55  ;;  %v1899_v7 = vpack.c.bf16 %v1830_v59, %v1830_v59  ;;  %v1826_v31 = vsel %vm453_vm13, %v1818_v4, %v1825_v18  ;;  %v3549_v2 = vpop.eup %3548  ;;  %v1877_v23 = vrot.slane %v1872_v24, 4 }
 0x4ab   :  { %v1900_v33 = vpack.c.bf16 %v1884_v13, %v1884_v13  ;;  %v1880_v20 = vsel %vm453_vm13, %v1872_v24, %v1879_v38  ;;  %v1895_v10 = vpack.c.bf16 %v1826_v31, %v1826_v31  ;;  %3552 = vrcp.f32 %v2268_v52  ;;  %v3551_v40 = vpop.eup %3550 }
 0x4ac   :  { %v2423_v5 = vpack.c.b16 %v2422_v56, %v2421_v9  ;;  %v2538_v46 = vunpack.c.l.b16 %v1899_v7  ;;  %v1878_v11 = vsel %vm453_vm13, %v1877_v23, %v1860_v3  ;;  %v1896_v39 = vpack.c.bf16 %v1880_v20, %v1880_v20 }
 0x4ad   :  { %v2539_v45 = vunpack.c.l.b16 %v1900_v33  ;;  %v1894_v1 = vpack.c.bf16 %v1878_v11, %v1878_v11  ;;  %v2454_v35 = vunpack.c.l.b16 %v1893_v42  ;;  %v2482_v37 = vunpack.c.l.b16 %v1895_v10 }
 0x4ae   :  { %v2286_v58 = vpop.xlane.xlu0 %2285  ;;  %3282 = vmatmul.msk.bf16.vlgmr.msrb.gmra.mxu3 %vm2142_vm15, %v2423_v5  ;;  %v2311_v61 = vmul.f32 %v3549_v2, %v4889_v14  ;;  %v2483_v8 = vunpack.c.l.b16 %v1896_v39  ;;  %v2317_v19 = vmul.f32 %v3551_v40, %v4902_v44 }
 0x4af   :  { %3554 = vrcp.f32 %v2286_v58  ;;  %v2540_v32 = vpack.c.b16 %v2539_v45, %v2538_v46  ;;  %v2455_v12 = vunpack.c.l.b16 %v1894_v1 }
 0x4b0   :  { %3556 = vrcp.f32 %v2271_v27  ;;  %v2484_v48 = vpack.c.b16 %v2483_v8, %v2482_v37  ;;  %v2327_v15 = vpack.c.bf16 %v2311_v61, %v2311_v61  ;;  %v2333_v16 = vpack.c.bf16 %v2317_v19, %v2317_v19 }
 0x4b1   :  { %2552 = vmatpush.bf16.msra.mxu3 %v2540_v32  ;;  %v3553_v28 = vpop.eup %3552  ;;  %v2456_v49 = vpack.c.b16 %v2455_v12, %v2454_v35 }
 0x4b2   :  { %2496 = vmatpush.bf16.msrb.mxu1 %v2484_v48  ;;  %v2312_v50 = vmul.f32 %v3553_v28, %v4921_v30  ;;  %v2449_v25 = vunpack.c.l.b16 %v2327_v15  ;;  %v2533_v52 = vunpack.c.l.b16 %v2333_v16 }
 0x4b3   :  { %2468 = vmatpush.bf16.msrb.mxu0 %v2456_v49 }
 0x4b4   :  { %v2328_v4 = vpack.c.bf16 %v2312_v50, %v2312_v50 }
 0x4b5   :  { %v3555_v43 = vpop.eup %3554 }
 0x4b6   :  { %v2318_v14 = vmul.f32 %v3555_v43, %v4926_v36  ;;  %v2274_v41 = vpop.xlane.xlu0 %2273  ;;  %v3557_v9 = vpop.eup %3556  ;;  %v2450_v44 = vunpack.c.l.b16 %v2328_v4 }
 0x4b7   :  { %3558 = vrcp.f32 %v2274_v41  ;;  %v2313_v29 = vmul.f32 %v3557_v9, %v4912_v34 }
 0x4b8   :  { %3560 = vrcp.f32 %v5002_v53  ;;  %v2334_v60 = vpack.c.bf16 %v2318_v14, %v2318_v14  ;;  %v2451_v54 = vpack.c.b16 %v2450_v44, %v2449_v25 }
 0x4b9   :  { %v2329_v36 = vpack.c.bf16 %v2313_v29, %v2313_v29 }
 0x4ba   :  { %v2534_v0 = vunpack.c.l.b16 %v2334_v60  ;;  %3283 = vmatmul.msk.bf16.vlgmr.msrb.gmra.mxu0 %vm2142_vm15, %v2451_v54 }
 0x4bb   :  { %v2477_v47 = vunpack.c.l.b16 %v2329_v36 }
 0x4bc   :  { %v2535_v30 = vpack.c.b16 %v2534_v0, %v2533_v52 }
 0x4bd   :  { %v3559_v6 = vpop.eup %3558 }
 0x4be   :  { %v2277_v55 = vpop.xlane.xlu2 %2276  ;;  %v3561_v3 = vpop.eup %3560  ;;  %v2314_v62 = vmul.f32 %v3559_v6, %v4932_v51  ;;  %3286 = vmatmul.msk.bf16.vlgmr.msra.gmra.mxu3 %vm2142_vm15, %v2535_v30 }
 0x4bf   :  { %3562 = vrcp.f32 %v2277_v55  ;;  %v2316_v22 = vmul.f32 %v3561_v3, %v4900_v26 }
 0x4c0   :  { %v2330_v53 = vpack.c.bf16 %v2314_v62, %v2314_v62 }
 0x4c1   :  { %v2332_v56 = vpack.c.bf16 %v2316_v22, %v2316_v22 }
 0x4c2   :  { %v2478_v63 = vunpack.c.l.b16 %v2330_v53 }
 0x4c3   :  { %v2506_v59 = vunpack.c.l.b16 %v2332_v56 }
 0x4c4   :  { %v2479_v18 = vpack.c.b16 %v2478_v63, %v2477_v47 }
 0x4c5   :  { %v3563_v34 = vpop.eup %3562 }
 0x4c6   :  { %v2315_v24 = vmul.f32 %v3563_v34, %v4936_v17  ;;  %3284 = vmatmul.msk.bf16.vlgmr.msrb.gmra.mxu1 %vm2142_vm15, %v2479_v18 }
 0x4c8   :  { %v2331_v42 = vpack.c.bf16 %v2315_v24, %v2315_v24 }
 0x4ca   :  { %v2505_v13 = vunpack.c.l.b16 %v2331_v42 }
 0x4cc   :  { %v2507_v7 = vpack.c.b16 %v2506_v59, %v2505_v13 }
 0x4ce   :  { %3285 = vmatmul.msk.bf16.vlgmr.msrb.gmra.mxu2 %vm2142_vm15, %v2507_v7 }
 0x510   :  { %v2414_v31 = vpop.f32.mrf.mxu2 }
 0x511   :  { %v2559_v2 = vrot.slane %v2414_v31, 4 }
 0x518   :  { %v2416_v23 = vpop.f32.mrf.mxu2 }
 0x519   :  { %v2615_v10 = vrot.slane %v2416_v23, 4 }
 0x51c   :  { %v2358_v51 = vpop.f32.mrf.mxu0 }
 0x51d   :  { %v2561_v38 = vrot.slane %v2358_v51, 4  ;;  %v2560_v33 = vsel %vm453_vm13, %v2559_v2, %v2358_v51 }
 0x51e   :  { %v2566_v40 = vperm.slane %v2560_v33, %v3872_v57 }
 0x51f   :  { %v2562_v5 = vsel %vm453_vm13, %v2414_v31, %v2561_v38 }
 0x520   :  { %v2570_v20 = vperm.slane %v2562_v5, %v3872_v57  ;;  %v2585_v61 = vrot.slane %v2566_v40, 4 }
 0x522   :  { %v2597_v35 = vrot.slane %v2570_v20, 4 }
 0x524   :  { %v2360_v26 = vpop.f32.mrf.mxu0 }
 0x525   :  { %v2386_v46 = vpop.f32.mrf.mxu1  ;;  %v2617_v17 = vrot.slane %v2360_v26, 4  ;;  %v2616_v11 = vsel %vm453_vm13, %v2615_v10, %v2360_v26 }
 0x526   :  { %v2573_v27 = vrot.slane %v2386_v46, 4  ;;  %v2622_v32 = vperm.slane %v2616_v11, %v3872_v57 }
 0x527   :  { %v2618_v39 = vsel %vm453_vm13, %v2416_v23, %v2617_v17 }
 0x528   :  { %v2626_v12 = vperm.slane %v2618_v39, %v3872_v57  ;;  %v2641_v9 = vrot.slane %v2622_v32, 4 }
 0x52a   :  { %v2653_v25 = vrot.slane %v2626_v12, 4 }
 0x52d   :  { %v2388_v16 = vpop.f32.mrf.mxu1 }
 0x52e   :  { %v2629_v6 = vrot.slane %v2388_v16, 4 }
 0x531   :  { %v2442_v45 = vpop.f32.mrf.mxu3 }
 0x532   :  { %v2571_v58 = vrot.slane %v2442_v45, 4  ;;  %v2574_v1 = vsel %vm453_vm13, %v2442_v45, %v2573_v27 }
 0x533   :  { %v2582_v37 = vperm.slane %v2574_v1, %v3872_v57 }
 0x534   :  { %v2572_v8 = vsel %vm453_vm13, %v2571_v58, %v2386_v46 }
 0x535   :  { %v2578_v19 = vperm.slane %v2572_v8, %v3872_v57  ;;  %v2595_v48 = vrot.slane %v2582_v37, 4  ;;  %v2598_v28 = vsel %vm453_vm13, %v2582_v37, %v2597_v35 }
 0x536   :  { %v2606_v49 = vperm.slane %v2598_v28, %v3890_v21 }
 0x537   :  { %v2583_v15 = vrot.slane %v2578_v19, 4  ;;  %v2586_v50 = vsel %vm453_vm13, %v2578_v19, %v2585_v61  ;;  %v2596_v43 = vsel %vm453_vm13, %v2595_v48, %v2570_v20  ;;  %v5088_v60 = vpop.f32.mrf.mxu0 }
 0x538   :  { %v2594_v4 = vperm.slane %v2586_v50, %v3890_v21  ;;  %v2602_v14 = vperm.slane %v2596_v43, %v3890_v21  ;;  %v2613_v41 = vrot.slane %v2606_v49, 4  ;;  %v2673_v24 = vrot.slane %v5088_v60, 4 }
 0x539   :  { %v2584_v44 = vsel %vm453_vm13, %v2583_v15, %v2566_v40  ;;  %v2444_v52 = vpop.f32.mrf.mxu3 }
 0x53a   :  { %v2590_v29 = vperm.slane %v2584_v44, %v3890_v21  ;;  %v2609_v54 = vrot.slane %v2594_v4, 4  ;;  %v2611_v0 = vrot.slane %v2602_v14, 4  ;;  %v2614_v30 = vsel %vm453_vm13, 0.0, %v2613_v41 }
 0x53b   :  { %v2794_v55 = vsel %vm453_vm13, %v2613_v41, %v2602_v14  ;;  %v2799_v3 = vrot.slane %v2614_v30, 4  ;;  %v2627_v36 = vrot.slane %v2444_v52, 4  ;;  %v2630_v18 = vsel %vm453_vm13, %v2444_v52, %v2629_v6 }
 0x53c   :  { %v2607_v62 = vrot.slane %v2590_v29, 4  ;;  %v2610_v53 = vsel %vm453_vm13, 0.0, %v2609_v54  ;;  %v2612_v22 = vsel %vm453_vm13, 0.0, %v2611_v0  ;;  %v5096_v47 = vperm.slane %v2794_v55, %v3872_v57 }
 0x53d   :  { %v2788_v63 = vrot.slane %v2610_v53, 4  ;;  %v2628_v34 = vsel %vm453_vm13, %v2627_v36, %v2388_v16  ;;  %v2783_v56 = vsel %vm453_vm13, %v2609_v54, %v2590_v29  ;;  %v2638_v59 = vperm.slane %v2630_v18, %v3872_v57 }
 0x53e   :  { %v2634_v42 = vperm.slane %v2628_v34, %v3872_v57  ;;  %v2608_v13 = vsel %vm453_vm13, 0.0, %v2607_v62  ;;  %v5106_v7 = vperm.slane %v2783_v56, %v3872_v57  ;;  %v2800_v31 = vsel %vm453_vm13, %v2799_v3, %v2612_v22 }
 0x53f   :  { %v2789_v51 = vsel %vm453_vm13, %v2788_v63, %v2608_v13  ;;  %v2819_v38 = vrot.slane %v5096_v47, 4  ;;  %v2651_v5 = vrot.slane %v2638_v59, 4  ;;  %v2654_v23 = vsel %vm453_vm13, %v2638_v59, %v2653_v25  ;;  %v5115_v17 = vpop.f32.mrf.mxu0 }
 0x540   :  { %v2639_v2 = vrot.slane %v2634_v42, 4  ;;  %v2642_v26 = vsel %vm453_vm13, %v2634_v42, %v2641_v9  ;;  %v2662_v46 = vperm.slane %v2654_v23, %v3890_v21  ;;  %v2793_v10 = vperm.slane %v2789_v51, %v3872_v57 }
 0x541   :  { %v2650_v33 = vperm.slane %v2642_v26, %v3890_v21  ;;  %v2554_v20 = vpop.f32.mrf.mxu3  ;;  %v5119_v40 = vperm.slane %v2800_v31, %v3872_v57  ;;  %v2652_v11 = vsel %vm453_vm13, %v2651_v5, %v2626_v12  ;;  %v2729_v45 = vrot.slane %v5115_v17, 4 }
 0x542   :  { %v2640_v27 = vsel %vm453_vm13, %v2639_v2, %v2622_v32  ;;  %v2683_v39 = vrot.slane %v2554_v20, 4  ;;  %v2658_v1 = vperm.slane %v2652_v11, %v3890_v21  ;;  %v2669_v37 = vrot.slane %v2662_v46, 4 }
 0x543   :  { %v2646_v58 = vperm.slane %v2640_v27, %v3890_v21  ;;  %v2665_v35 = vrot.slane %v2650_v33, 4  ;;  %v2498_v61 = vpop.f32.mrf.mxu1  ;;  %v2805_v48 = vrot.slane %v2793_v10, 4  ;;  %v2807_v28 = vrot.slane %v5106_v7, 4 }
 0x544   :  { %v2684_v8 = vsel %vm453_vm13, %v2683_v39, %v2498_v61  ;;  %v2685_v19 = vrot.slane %v2498_v61, 4  ;;  %v2667_v12 = vrot.slane %v2658_v1, 4  ;;  %v2670_v15 = vsel %vm453_vm13, 0.0, %v2669_v37 }
 0x545   :  { %v2663_v49 = vrot.slane %v2646_v58, 4  ;;  %v2666_v32 = vsel %vm453_vm13, 0.0, %v2665_v35  ;;  %v2848_v43 = vsel %vm453_vm13, %v2669_v37, %v2658_v1  ;;  %v2853_v16 = vrot.slane %v2670_v15, 4 }
 0x546   :  { %v2842_v50 = vrot.slane %v2666_v32, 4  ;;  %v2686_v4 = vsel %vm453_vm13, %v2554_v20, %v2685_v19  ;;  %v2668_v14 = vsel %vm453_vm13, 0.0, %v2667_v12  ;;  %v2852_v41 = vperm.slane %v2848_v43, %v3872_v57 }
 0x547   :  { %v5135_v9 = vperm.slane %v2684_v8, %v3872_v57  ;;  %v5138_v25 = vperm.slane %v2686_v4, %v3872_v57  ;;  %v2664_v44 = vsel %vm453_vm13, 0.0, %v2663_v49  ;;  %v2808_v52 = vsel %vm453_vm13, %v2793_v10, %v2807_v28 }
 0x548   :  { %v2820_v29 = vsel %vm453_vm13, %v5119_v40, %v2819_v38  ;;  %v2837_v54 = vsel %vm453_vm13, %v2665_v35, %v2646_v58  ;;  %v2816_v55 = vperm.slane %v2808_v52, %v3890_v21  ;;  %v2843_v53 = vsel %vm453_vm13, %v2842_v50, %v2664_v44 }
 0x549   :  { %v2695_v0 = vrot.slane %v5135_v9, 4  ;;  %v2707_v30 = vrot.slane %v5138_v25, 4  ;;  %v2556_v6 = vpop.f32.mrf.mxu3  ;;  %v2828_v3 = vperm.slane %v2820_v29, %v3890_v21  ;;  %v2841_v62 = vperm.slane %v2837_v54, %v3872_v57 }
 0x54a   :  { %v2739_v36 = vrot.slane %v2556_v6, 4  ;;  %v2854_v22 = vsel %vm453_vm13, %v2853_v16, %v2668_v14  ;;  %v2835_v18 = vrot.slane %v2816_v55, 4  ;;  %v2847_v56 = vperm.slane %v2843_v53, %v3872_v57 }
 0x54b   :  { %v2500_v63 = vpop.f32.mrf.mxu1  ;;  %v2833_v34 = vrot.slane %v2828_v3, 4  ;;  %v2858_v42 = vperm.slane %v2854_v22, %v3872_v57  ;;  %v2861_v51 = vrot.slane %v2841_v62, 4  ;;  %v2873_v31 = vrot.slane %v2852_v41, 4 }
 0x54c   :  { %v2740_v59 = vsel %vm453_vm13, %v2739_v36, %v2500_v63  ;;  %v2741_v13 = vrot.slane %v2500_v63, 4  ;;  %v2859_v26 = vrot.slane %v2847_v56, 4  ;;  %v2836_v5 = vsel %vm453_vm13, %v2828_v3, %v2835_v18 }
 0x54d   :  { %v5156_v38 = vperm.slane %v2740_v59, %v3872_v57  ;;  %v2834_v2 = vsel %vm453_vm13, %v2833_v34, %v2816_v55  ;;  %v2862_v33 = vsel %vm453_vm13, %v2847_v56, %v2861_v51  ;;  %v2874_v46 = vsel %vm453_vm13, %v2858_v42, %v2873_v31 }
 0x54e   :  { %v2742_v23 = vsel %vm453_vm13, %v2556_v6, %v2741_v13  ;;  %v2806_v20 = vsel %vm453_vm13, %v2805_v48, %v5106_v7  ;;  %v2870_v11 = vperm.slane %v2862_v33, %v3890_v21  ;;  %v2882_v39 = vperm.slane %v2874_v46, %v3890_v21 }
 0x54f   :  { %v5166_v10 = vperm.slane %v2742_v23, %v3872_v57  ;;  %v2751_v27 = vrot.slane %v5156_v38, 4  ;;  %v2812_v1 = vperm.slane %v2806_v20, %v3890_v21  ;;  %v2817_v35 = vrot.slane %v5119_v40, 4 }
 0x550   :  { %v2860_v37 = vsel %vm453_vm13, %v2859_v26, %v2841_v62  ;;  %v2871_v61 = vrot.slane %v2858_v42, 4  ;;  %v2887_v7 = vrot.slane %v2882_v39, 4  ;;  %v2889_v19 = vrot.slane %v2870_v11, 4 }
 0x551   :  { %v2526_v58 = vpop.f32.mrf.mxu2  ;;  %v2763_v8 = vrot.slane %v5166_v10, 4  ;;  %v2818_v49 = vsel %vm453_vm13, %v2817_v35, %v5096_v47  ;;  %v2831_v32 = vrot.slane %v2812_v1, 4  ;;  %v2866_v12 = vperm.slane %v2860_v37, %v3890_v21 }
 0x552   :  { %v2671_v48 = vrot.slane %v2526_v58, 4  ;;  %v2674_v28 = vsel %vm453_vm13, %v2526_v58, %v2673_v24  ;;  %v2888_v40 = vsel %vm453_vm13, %v2887_v7, %v2870_v11  ;;  %v2890_v43 = vsel %vm453_vm13, %v2882_v39, %v2889_v19 }
 0x553   :  { %v2682_v50 = vperm.slane %v2674_v28, %v3872_v57  ;;  %v3462_v16 = vpack.i.bf16 %v2888_v40, %v2834_v2  ;;  %v3467_v14 = vpack.i.bf16 %v2890_v43, %v2836_v5  ;;  %v2824_v24 = vperm.slane %v2818_v49, %v3890_v21 }
 0x554   :  { %v2672_v15 = vsel %vm453_vm13, %v2671_v48, %v5088_v60  ;;  %v2872_v52 = vsel %vm453_vm13, %v2871_v61, %v2852_v41  ;;  %v2885_v29 = vrot.slane %v2866_v12, 4 }
 0x555   :  { %v2678_v4 = vperm.slane %v2672_v15, %v3872_v57  ;;  %v2708_v47 = vsel %vm453_vm13, %v2707_v30, %v2682_v50  ;;  %v2709_v44 = vrot.slane %v2682_v50, 4  ;;  %3463 = vrot.lane.b32.xlu0 %v3462_v16, %s3700_s19  ;;  %3468 = vrot.lane.b32.xlu2 %v3467_v14, %s3704_s21  ;;  %v2829_v55 = vrot.slane %v2824_v24, 4 }
 0x556   :  { %v2714_v6 = vperm.slane %v2708_v47, %v3890_v21  ;;  %v2832_v30 = vsel %vm453_vm13, %v2824_v24, %v2831_v32  ;;  %v2878_v41 = vperm.slane %v2872_v52, %v3890_v21 }
 0x557   :  { %v2696_v60 = vsel %vm453_vm13, %v2695_v0, %v2678_v4  ;;  %v2697_v54 = vrot.slane %v2678_v4, 4  ;;  %v2710_v36 = vsel %vm453_vm13, %v5138_v25, %v2709_v44  ;;  %v5203_v63 = vsel %vm453_vm13, %v2829_v55, %v2812_v1 }
 0x558   :  { %v2702_v3 = vperm.slane %v2696_v60, %v3890_v21  ;;  %v2718_v0 = vperm.slane %v2710_v36, %v3890_v21  ;;  %v2723_v53 = vrot.slane %v2714_v6, 4  ;;  %v2883_v56 = vrot.slane %v2878_v41, 4 }
 0x559   :  { %v2698_v62 = vsel %vm453_vm13, %v5135_v9, %v2697_v54  ;;  %v2528_v22 = vpop.f32.mrf.mxu2  ;;  %v2886_v25 = vsel %vm453_vm13, %v2878_v41, %v2885_v29 }
 0x55a   :  { %v2706_v34 = vperm.slane %v2698_v62, %v3890_v21  ;;  %v2719_v18 = vrot.slane %v2702_v3, 4  ;;  %v2724_v42 = vsel %vm453_vm13, 0.0, %v2723_v53  ;;  %v2725_v59 = vrot.slane %v2718_v0, 4 }
 0x55b   :  { %v3457_v13 = vpack.i.bf16 %v2886_v25, %v2832_v30  ;;  %v2727_v51 = vrot.slane %v2528_v22, 4  ;;  %v2730_v9 = vsel %vm453_vm13, %v2528_v22, %v2729_v45  ;;  %v5213_v26 = vsel %vm453_vm13, %v2883_v56, %v2866_v12 }
 0x55c   :  { %v2721_v31 = vrot.slane %v2706_v34, 4  ;;  %v2720_v2 = vsel %vm453_vm13, 0.0, %v2719_v18  ;;  %v2726_v5 = vsel %vm453_vm13, 0.0, %v2725_v59  ;;  %v2902_v23 = vsel %vm453_vm13, %v2725_v59, %v2714_v6 }
 0x55d   :  { %3458 = vrot.lane.b32.xlu1 %v3457_v13, %s3703_s2  ;;  %v2728_v33 = vsel %vm453_vm13, %v2727_v51, %v5115_v17  ;;  %v2738_v46 = vperm.slane %v2730_v9, %v3872_v57  ;;  %v2906_v45 = vperm.slane %v2902_v23, %v3872_v57  ;;  %v2907_v11 = vrot.slane %v2726_v5, 4 }
 0x55e   :  { %v2722_v20 = vsel %vm453_vm13, 0.0, %v2721_v31  ;;  %v2734_v39 = vperm.slane %v2728_v33, %v3872_v57  ;;  %v2891_v37 = vsel %vm453_vm13, %v2721_v31, %v2702_v3 }
 0x55f   :  { %v2896_v58 = vrot.slane %v2722_v20, 4  ;;  %v2764_v1 = vsel %vm453_vm13, %v2763_v8, %v2738_v46  ;;  %v2765_v35 = vrot.slane %v2738_v46, 4  ;;  %v2908_v61 = vsel %vm453_vm13, %v2907_v11, %v2724_v42 }
 0x560   :  { %v2752_v17 = vsel %vm453_vm13, %v2751_v27, %v2734_v39  ;;  %v2753_v7 = vrot.slane %v2734_v39, 4  ;;  %v2770_v19 = vperm.slane %v2764_v1, %v3890_v21  ;;  %v2895_v49 = vperm.slane %v2891_v37, %v3872_v57 }
 0x561   :  { %v2758_v48 = vperm.slane %v2752_v17, %v3890_v21  ;;  %v2766_v28 = vsel %vm453_vm13, %v5166_v10, %v2765_v35  ;;  %v2897_v8 = vsel %vm453_vm13, %v2896_v58, %v2720_v2  ;;  %v2912_v43 = vperm.slane %v2908_v61, %v3872_v57 }
 0x562   :  { %v2754_v32 = vsel %vm453_vm13, %v5156_v38, %v2753_v7  ;;  %v2774_v12 = vperm.slane %v2766_v28, %v3890_v21  ;;  %v2779_v40 = vrot.slane %v2770_v19, 4  ;;  %v2901_v27 = vperm.slane %v2897_v8, %v3872_v57 }
 0x563   :  { %v2762_v15 = vperm.slane %v2754_v32, %v3890_v21  ;;  %v2775_v50 = vrot.slane %v2758_v48, 4  ;;  %v2927_v10 = vrot.slane %v2906_v45, 4  ;;  %v2915_v47 = vrot.slane %v2895_v49, 4 }
 0x564   :  { %v2781_v16 = vrot.slane %v2774_v12, 4  ;;  %v2913_v4 = vrot.slane %v2901_v27, 4  ;;  %v2780_v24 = vsel %vm453_vm13, 0.0, %v2779_v40  ;;  %v2925_v29 = vrot.slane %v2912_v43, 4 }
 0x565   :  { %v2777_v14 = vrot.slane %v2762_v15, 4  ;;  %v2928_v52 = vsel %vm453_vm13, %v2912_v43, %v2927_v10  ;;  %v2776_v60 = vsel %vm453_vm13, 0.0, %v2775_v50  ;;  %v2916_v0 = vsel %vm453_vm13, %v2901_v27, %v2915_v47  ;;  %v3350_v15 = vld [vmem:[#allocation8 + $0x38] sm:$0xff]  ;;  %v3349_v50 = vld [vmem:[#allocation8 + $0x30] sm:$0xff]  ;;  %v3348_v43 = vld [vmem:[#allocation8 + $0x28] sm:$0xff] }
 0x566   :  { %v2782_v44 = vsel %vm453_vm13, 0.0, %v2781_v16  ;;  %v2956_v38 = vsel %vm453_vm13, %v2781_v16, %v2770_v19  ;;  %v2936_v36 = vperm.slane %v2928_v52, %v3890_v21  ;;  %v2914_v41 = vsel %vm453_vm13, %v2913_v4, %v2895_v49  ;;  %3131 = vmatpush.bf16.msra.mxu0 %v3350_v15  ;;  %v3347_v16 = vld [vmem:[#allocation8 + $0x20] sm:$0xff]  ;;  %v3346_v4 = vld [vmem:[#allocation8 + $0x18] sm:$0xff]  ;;  %v3345_v10 = vld [vmem:[#allocation8 + $0x10] sm:$0xff] }
 0x567   :  { %v2778_v54 = vsel %vm453_vm13, 0.0, %v2777_v14  ;;  %v2960_v6 = vperm.slane %v2956_v38, %v3872_v57  ;;  %v2961_v55 = vrot.slane %v2782_v44, 4  ;;  %v2945_v30 = vsel %vm453_vm13, %v2777_v14, %v2758_v48  ;;  %v3344_v14 = vld [vmem:[#allocation8 + $0x8] sm:$0xff] }
 0x568   :  { %v2950_v3 = vrot.slane %v2778_v54, 4  ;;  %v2949_v53 = vperm.slane %v2945_v30, %v3872_v57  ;;  %v2926_v56 = vsel %vm453_vm13, %v2925_v29, %v2906_v45  ;;  %v2920_v59 = vperm.slane %v2914_v41, %v3890_v21 }
 0x569   :  { %v2962_v62 = vsel %vm453_vm13, %v2961_v55, %v2780_v24  ;;  %v2981_v22 = vrot.slane %v2960_v6, 4  ;;  %v2932_v13 = vperm.slane %v2926_v56, %v3890_v21  ;;  %v2924_v51 = vperm.slane %v2916_v0, %v3890_v21  ;;  %v3343_v24 = vld [vmem:[#allocation8] sm:$0xff] }
 0x56a   :  { %v2951_v34 = vsel %vm453_vm13, %v2950_v3, %v2776_v60  ;;  %v2966_v18 = vperm.slane %v2962_v62, %v3872_v57  ;;  %v2969_v42 = vrot.slane %v2949_v53, 4  ;;  %v2941_v31 = vrot.slane %v2936_v36, 4  ;;  %3132 = vmatpush.bf16.msra.mxu0 %v3349_v50 }
 0x56b   :  { %v2955_v25 = vperm.slane %v2951_v34, %v3872_v57  ;;  %v2937_v46 = vrot.slane %v2932_v13, 4  ;;  %v2939_v1 = vrot.slane %v2920_v59, 4 }
 0x56c   :  { %v2982_v9 = vsel %vm453_vm13, %v2966_v18, %v2981_v22  ;;  %v2979_v2 = vrot.slane %v2966_v18, 4  ;;  %v2942_v37 = vsel %vm453_vm13, %v2941_v31, %v2924_v51 }
 0x56d   :  { %v2970_v5 = vsel %vm453_vm13, %v2955_v25, %v2969_v42  ;;  %v2990_v23 = vperm.slane %v2982_v9, %v3890_v21  ;;  %v2967_v33 = vrot.slane %v2955_v25, 4  ;;  %v2938_v58 = vsel %vm453_vm13, %v2937_v46, %v2920_v59 }
 0x56e   :  { %v2978_v20 = vperm.slane %v2970_v5, %v3890_v21  ;;  %v2980_v57 = vsel %vm453_vm13, %v2979_v2, %v2960_v6  ;;  %v2940_v48 = vsel %vm453_vm13, %v2932_v13, %v2939_v1  ;;  %3133 = vmatpush.bf16.msra.mxu0 %v3348_v43 }
 0x56f   :  { %v2995_v45 = vrot.slane %v2990_v23, 4  ;;  %v2968_v11 = vsel %vm453_vm13, %v2967_v33, %v2949_v53  ;;  %v2986_v39 = vperm.slane %v2980_v57, %v3890_v21  ;;  %v3489_v33 = vld [vmem:[%s5309_s5] ss:$0 sm:$0xff] }
 0x570   :  { %v2974_v35 = vperm.slane %v2968_v11, %v3890_v21  ;;  %v2997_v32 = vrot.slane %v2978_v20, 4  ;;  %v2943_v21 = vrot.slane %v2924_v51, 4 }
 0x571   :  { %v2996_v61 = vsel %vm453_vm13, %v2995_v45, %v2978_v20  ;;  %v2991_v17 = vrot.slane %v2986_v39, 4 }
 0x572   :  { %v3477_v7 = vpack.i.bf16 %v2996_v61, %v2942_v37  ;;  %v2993_v19 = vrot.slane %v2974_v35, 4  ;;  %v2998_v12 = vsel %vm453_vm13, %v2990_v23, %v2997_v32  ;;  %v2944_v40 = vsel %vm453_vm13, %v2936_v36, %v2943_v21  ;;  %3134 = vmatpush.bf16.msra.mxu0 %v3347_v16 }
 0x573   :  { %v2992_v8 = vsel %vm453_vm13, %v2991_v17, %v2974_v35  ;;  %v3482_v27 = vpack.i.bf16 %v2998_v12, %v2944_v40 }
 0x574   :  { %3478 = vrot.lane.b32.xlu0 %v3477_v7, %s3700_s19  ;;  %v2994_v28 = vsel %vm453_vm13, %v2986_v39, %v2993_v19 }
 0x575   :  { %v3472_v49 = vpack.i.bf16 %v2994_v28, %v2940_v48 }
 0x576   :  { %3135 = vmatpush.bf16.msra.mxu0 %v3346_v4 }
 0x577   :  { %3473 = vrot.lane.b32.xlu1 %v3472_v49, %s3703_s2 }
 0x57a   :  { %3136 = vmatpush.bf16.msra.mxu0 %v3345_v10 }
 0x57e   :  { %3137 = vmatpush.bf16.msra.mxu0 %v3344_v14 }
 0x57f   :  { %3483 = vrot.lane.b32.xlu1 %v3482_v27, %s3704_s21 }
 0x582   :  { %3138 = vmatpush.bf16.msra.mxu0 %v3343_v24 }
 0x5af   :  { %v3469_v44 = vpop.permute.xlu2 %3468 }
 0x5b0   :  { %v3471_v6 = vunpack.i.h.bf16 %v3469_v44  ;;  %v3470_v55 = vunpack.i.l.bf16 %v3469_v44 }
 0x5c7   :  { %v3464_v47 = vpop.permute.xlu0 %3463 }
 0x5c8   :  { %v3466_v60 = vunpack.i.h.bf16 %v3464_v47  ;;  %v3465_v54 = vunpack.i.l.bf16 %v3464_v47 }
 0x5cf   :  { %v3459_v38 = vpop.permute.xlu1 %3458 }
 0x5d0   :  { %v3461_v52 = vunpack.i.h.bf16 %v3459_v38  ;;  %v3460_v29 = vunpack.i.l.bf16 %v3459_v38 }
 0x5d2   :  { %v3048_v3 = vsel %vm1911_vm14, %v5213_v26, %v3461_v52  ;;  %v3047_v36 = vsel %vm1911_vm14, %v5203_v63, %v3460_v29 }
 0x5d3   :  { %v3053_v30 = vsel %vm3051_vm0, %v3048_v3, %v3466_v60  ;;  %v3052_v41 = vsel %vm3051_vm0, %v3047_v36, %v3465_v54 }
 0x5d4   :  { %v3057_v62 = vsel %vm3056_vm1, %v3052_v41, %v3470_v55  ;;  %v3058_v0 = vsel %vm3056_vm1, %v3053_v30, %v3471_v6 }
 0x5d5   :  { %v3061_v53 = vpack.c.bf16 %v3058_v0, %v3057_v62 }
 0x5d7   :  { %3139 = vmatmul.bf16.vlgmr.msra.gmra.mxu0 %v3061_v53 }
 0x5e6   :  { %v3479_v56 = vpop.permute.xlu0 %3478 }
 0x5e7   :  { %v3481_v42 = vunpack.i.h.bf16 %v3479_v56  ;;  %v3480_v63 = vunpack.i.l.bf16 %v3479_v56 }
 0x5e9   :  { %v3474_v22 = vpop.permute.xlu1 %3473 }
 0x5ea   :  { %v3476_v34 = vunpack.i.h.bf16 %v3474_v22  ;;  %v3475_v18 = vunpack.i.l.bf16 %v3474_v22 }
 0x5ec   :  { %v3049_v25 = vsel %vm1911_vm14, %v2938_v58, %v3475_v18  ;;  %v3050_v26 = vsel %vm1911_vm14, %v2992_v8, %v3476_v34 }
 0x5ed   :  { %v3054_v31 = vsel %vm3051_vm0, %v3049_v25, %v3480_v63  ;;  %v3055_v9 = vsel %vm3051_vm0, %v3050_v26, %v3481_v42 }
 0x5f1   :  { %v3484_v59 = vpop.permute.xlu1 %3483 }
 0x5f2   :  { %v3486_v13 = vunpack.i.h.bf16 %v3484_v59  ;;  %v3485_v51 = vunpack.i.l.bf16 %v3484_v59 }
 0x5f4   :  { %v3059_v2 = vsel %vm3056_vm1, %v3054_v31, %v3485_v51  ;;  %v3060_v5 = vsel %vm3056_vm1, %v3055_v9, %v3486_v13 }
 0x5f5   :  { %v3062_v23 = vpack.c.bf16 %v3060_v5, %v3059_v2 }
 0x5f7   :  { %3144 = vmatmul.bf16.gmra.mxu0 %v3062_v23 }
 0x654   :  { %v3140_v46 = vpop.f32.mrf.mxu0 }
 0x655   :  { %v3141_v20 = vadd.f32 %v3489_v33, %v3140_v46 }
 0x657   :  { %3150 = vst [vmem:[#allocation10] sm:$0xff] %v3141_v20 }
 0x65c   :  { %v3142_v57 = vpop.f32.mrf.mxu0 }
 0x65d   :  { %v3143_v45 = vadd.f32 %v3489_v33, %v3142_v57 }
 0x65f   :  { %3151 = vst [vmem:[#allocation10 + $0x8] sm:$0xff] %v3143_v45 }
 0x674   :  { %v3145_v11 = vpop.f32.mrf.mxu0 }
 0x675   :  { %v3146_v39 = vadd.f32 %v3489_v33, %v3145_v11 }
 0x677   :  { %3152 = vst [vmem:[#allocation10 + $0x10] sm:$0xff] %v3146_v39 }
 0x67c   :  { %v3147_v58 = vpop.f32.mrf.mxu0 }
 0x67d   :  { %v3148_v1 = vadd.f32 %v3489_v33, %v3147_v58 }
 0x67f   :  { %3153 = vst [vmem:[#allocation10 + $0x18] sm:$0xff] %v3148_v1 }
 0x680   :  { %3166 = dma.vmem_to_hbm [thread:$0]  %s3159_s25, 512, %s3161_s28, [#allocation4], %s3694_s7, %s3694_s7, %s3695_s8  }
 0x681   :  { %3690 = dma.done.wait [#allocation4], 512  }
 0x682   :  { %3691 = vsyncadd [#allocation4], 4294966784 }
 0x683   :  { %3171 = vsyncpa [#allocation3], 1 }
 0x684   :  { %3172 = vsyncpa [#allocation6], 1 }
 0x685   :  { %3173 = vsyncpa [#allocation9], 1 }
 0x686   :  { %3174 = vsyncpa [#allocation4], 1 }

</bundles_post_ra>
